<compile_context>
chip_gen: v5e
topology: v5e:2x2
jax: 0.10.0
libtpu: 0.0.40
codegen_flags: <defaults>
</compile_context>

<pallas_src>
import functools
import math

import jax
import jax.numpy as jnp
import numpy as np
from jax.experimental import pallas as pl
from jax.experimental.pallas import tpu as pltpu

LN_EPS = 1e-5    # nn.LayerNorm default
BN_EPS = 1e-5    # nn.BatchNorm1d default
NUM_HEAD = 4     # ExplainerModel(num_head=4)
HEAD_PAD = 8     # head dim padded 4 -> 8 for unmasked 8-sublane output stores


def _round_up(x, m):
    return ((x + m - 1) // m) * m


def _cdiv(a, b):
    return (a + b - 1) // b


def _pick_tile(size, target, mult):
    # Smallest multiple of `mult` such that the padded total stays close to
    # `size` (avoids the round_up(size, tile) ~2x padding blow-up).
    size_r = _round_up(max(size, 1), mult)
    if size_r <= target:
        return size_r
    return _round_up(_cdiv(size_r, _cdiv(size_r, target)), mult)


def _pad_rows(a, rows):
    if a.shape[0] == rows:
        return a
    return jnp.pad(a, [(0, rows - a.shape[0])] + [(0, 0)] * (a.ndim - 1))


# ----------------------------------------------------------------------------
# Fused kernel: node embed + LN -> projected node tables (step 0, VMEM scratch)
#               in-kernel gathers + fused MLP + softmax[..., 1] (every step)
# ----------------------------------------------------------------------------
def _fused_kernel(r_ref, c_ref, g_ref, x_ref, wx_ref, bx_ref, lng_ref, lnb_ref,
                  wbig_ref, bbig_ref, w1t_ref, b1d_ref, out_ref, nproj_ref):
    n_pad = nproj_ref.shape[1]
    tile_e = r_ref.shape[0]

    # --- grid step 0: node embedding + LayerNorm, then fold through the
    #     (edge-projection @ MLP-layer-0) weights into three per-node tables
    #     that stay VMEM-resident for every edge tile -------------------------
    @pl.when(pl.program_id(0) == 0)
    def _():
        h = jnp.dot(x_ref[...].astype(jnp.bfloat16), wx_ref[...],
                    preferred_element_type=jnp.float32) + bx_ref[...]
        mu = jnp.mean(h, axis=-1, keepdims=True)
        var = jnp.mean(h * h, axis=-1, keepdims=True) - mu * mu  # one-pass var
        ne = ((h - mu) * jax.lax.rsqrt(var + LN_EPS) * lng_ref[...]
              + lnb_ref[...]).astype(jnp.bfloat16)
        for j in range(3):                      # j = 0: row, 1: col, 2: ego
            nproj_ref[j] = jnp.dot(
                ne, wbig_ref[j],
                preferred_element_type=jnp.float32).astype(jnp.bfloat16)

    # --- every step: gather the three projected node rows with one-hot MXU
    #     matmuls (no [E, 3H] stream in HBM), then the fused MLP --------------
    iota_n = jax.lax.broadcasted_iota(jnp.int32, (tile_e, n_pad), 1)

    def gathered(idx_ref, j):
        onehot = (idx_ref[...] == iota_n).astype(jnp.float32).astype(jnp.bfloat16)
        return jnp.dot(onehot, nproj_ref[j], preferred_element_type=jnp.float32)

    h0 = gathered(r_ref, 0) + gathered(c_ref, 1) + gathered(g_ref, 2)
    h0 = jnp.maximum(h0 + bbig_ref[...], 0.0)       # fused bias (BN folded) + ReLU

    # ParallelMLP layer 1 + softmax(dim=-1)[..., 1] == sigmoid(logit1 - logit0)
    # via block-diagonal per-head difference weights; computed transposed so the
    # output block is [8, tile_e]: lane-dense, unmasked 8-sublane stores.
    diff_t = jax.lax.dot_general(
        w1t_ref[...], h0.astype(jnp.bfloat16),
        dimension_numbers=(((1,), (1,)), ((), ())),
        preferred_element_type=jnp.float32)
    out_ref[...] = jax.nn.sigmoid(diff_t + b1d_ref[...])


def fused_edge_forward(fp, x, rows, cols, ego, *, tile_e_target=1024):
    """One pallas_call for the whole eval forward; returns (E, NUM_HEAD)."""
    N, din = x.shape
    H = fp["wx"].shape[1]
    h4 = fp["wbig3"].shape[2]
    E = rows.shape[0]

    n_pad = _round_up(N, 16)                   # bf16 sublane packing
    x_p = _pad_rows(x, n_pad)

    tile_e = _pick_tile(E, tile_e_target, 128)
    e_pad = _round_up(E, tile_e)

    def pad_idx(v):
        v = v.astype(jnp.int32)
        return jnp.pad(v, (0, e_pad - E)).reshape(e_pad, 1)

    r_p, c_p, g_p = pad_idx(rows), pad_idx(cols), pad_idx(ego)

    idx_spec = pl.BlockSpec((tile_e, 1), lambda i: (i, 0))

    out_t = pl.pallas_call(
        _fused_kernel,
        out_shape=jax.ShapeDtypeStruct((HEAD_PAD, e_pad), jnp.float32),
        grid_spec=pltpu.PrefetchScalarGridSpec(
            num_scalar_prefetch=0,
            grid=(e_pad // tile_e,),
            in_specs=[
                idx_spec, idx_spec, idx_spec,                     # rows/cols/ego
                pl.BlockSpec((n_pad, din), lambda i: (0, 0)),     # node features
                pl.BlockSpec((din, H), lambda i: (0, 0)),         # Wx (bf16)
                pl.BlockSpec((1, H), lambda i: (0, 0)),           # bx
                pl.BlockSpec((1, H), lambda i: (0, 0)),           # LN gamma
                pl.BlockSpec((1, H), lambda i: (0, 0)),           # LN beta
                pl.BlockSpec((3, H, h4), lambda i: (0, 0, 0)),    # fused W (3 proj)
                pl.BlockSpec((1, h4), lambda i: (0, 0)),          # fused bias
                pl.BlockSpec((HEAD_PAD, h4), lambda i: (0, 0)),   # layer-1 diff W^T
                pl.BlockSpec((HEAD_PAD, 1), lambda i: (0, 0)),    # layer-1 diff b
            ],
            out_specs=pl.BlockSpec((HEAD_PAD, tile_e), lambda i: (0, i)),
            scratch_shapes=[pltpu.VMEM((3, n_pad, h4), jnp.bfloat16)],
        ),
        # Node tables in scratch are built at step 0 and reused -> sequential.
        compiler_params=pltpu.CompilerParams(
            dimension_semantics=("arbitrary",)),
    )(r_p, c_p, g_p, x_p, fp["wx"], fp["bx"], fp["ln_g"], fp["ln_b"],
      fp["wbig3"], fp["bbig"], fp["w1t8"], fp["b1d8"])
    return out_t[:NUM_HEAD, :E].T              # (E, NUM_HEAD)


# ----------------------------------------------------------------------------
# Host-side, ONE-TIME weight fusion (exact in eval mode)
# ----------------------------------------------------------------------------
def fuse_params(p):
    H = p["wr"].shape[0]
    bn_scale = 1.0 / math.sqrt(1.0 + BN_EPS)   # BatchNorm1d eval, fresh stats
    # ParallelMLP layer 0 as one [H, 4H] matrix matching torch's view(B, K*H):
    w0cat = jnp.transpose(p["w0"], (1, 0, 2)).reshape(H, NUM_HEAD * H) * bn_scale
    b0cat = p["b0"].reshape(1, NUM_HEAD * H) * bn_scale
    # Fold the three edge projections into layer 0 (no nonlinearity between):
    #   h0 = row@(Wr@W0) + col@(Wc@W0) + ego@(We@W0) + ((br+bc+be)@W0 + b0)
    wbig3 = jnp.stack([p["wr"] @ w0cat, p["wc"] @ w0cat, p["we"] @ w0cat], axis=0)
    bbig = (p["br"] + p["bc"] + p["be"]) @ w0cat + b0cat
    # Layer 1 + softmax[..., 1]: block-diagonal per-head class-difference
    # weights, stored transposed, head dim padded 4 -> 8.
    w1d = p["w1"][:, :, 1] - p["w1"][:, :, 0]                         # [K, H]
    eye = jnp.eye(NUM_HEAD, dtype=w1d.dtype)[:, :, None]
    w1t = (eye * w1d[:, None, :]).reshape(NUM_HEAD, NUM_HEAD * H)
    w1t8 = jnp.zeros((HEAD_PAD, NUM_HEAD * H), jnp.float32).at[:NUM_HEAD].set(w1t)
    b1d = p["b1"][:, 1] - p["b1"][:, 0]
    b1d8 = jnp.zeros((HEAD_PAD, 1), jnp.float32).at[:NUM_HEAD, 0].set(b1d)
    # bf16 MXU operands (native on v5e/v6e/v7x); accumulation / VPU math stay f32.
    return dict(
        wx=p["wx"].astype(jnp.bfloat16), bx=p["bx"],
        ln_g=p["ln_g"], ln_b=p["ln_b"],
        wbig3=wbig3.astype(jnp.bfloat16), bbig=bbig,
        w1t8=w1t8.astype(jnp.bfloat16), b1d8=b1d8)


# ----------------------------------------------------------------------------
# Parameter init (deterministic, matches the module's init scheme / shapes)
# ----------------------------------------------------------------------------
def _xavier_uniform(key, fan_in, fan_out, shape):
    a = math.sqrt(6.0 / float(fan_in + fan_out))
    return jax.random.uniform(key, shape, jnp.float32, -a, a)


def init_params(key, node_x_dim, hid_dim, num_head=NUM_HEAD):
    ks = jax.random.split(key, 6)
    p = {}
    p["wx"] = _xavier_uniform(ks[0], node_x_dim, hid_dim, (node_x_dim, hid_dim))
    p["bx"] = jnp.zeros((1, hid_dim), jnp.float32)
    p["ln_g"] = jnp.ones((1, hid_dim), jnp.float32)
    p["ln_b"] = jnp.zeros((1, hid_dim), jnp.float32)
    p["wr"] = _xavier_uniform(ks[1], hid_dim, hid_dim, (hid_dim, hid_dim))
    p["br"] = jnp.zeros((1, hid_dim), jnp.float32)
    p["wc"] = _xavier_uniform(ks[2], hid_dim, hid_dim, (hid_dim, hid_dim))
    p["bc"] = jnp.zeros((1, hid_dim), jnp.float32)
    p["we"] = _xavier_uniform(ks[3], hid_dim, hid_dim, (hid_dim, hid_dim))
    p["be"] = jnp.zeros((1, hid_dim), jnp.float32)
    p["w0"] = _xavier_uniform(ks[4], hid_dim, hid_dim, (num_head, hid_dim, hid_dim))
    p["b0"] = jnp.zeros((num_head, hid_dim), jnp.float32)
    p["w1"] = _xavier_uniform(ks[5], hid_dim, 2, (num_head, hid_dim, 2))
    p["b1"] = jnp.zeros((num_head, 2), jnp.float32)
    return p


# ----------------------------------------------------------------------------
# Full forward (eval path of HomoStructCFTM.forward)
# ----------------------------------------------------------------------------
def homo_struct_cftm_forward(fp, x, edge_index, batch, center_mask, *,
                             num_graphs, tile_e_target=1024):
    rows, cols = edge_index[0], edge_index[1]
    # _create_explainer_input ego selection (assumes one center per graph with
    # nonzero order matching graph-id order, like the PyTorch code).
    center_idx = jnp.nonzero(center_mask, size=num_graphs)[0].astype(jnp.int32)
    ego = jnp.take(center_idx, jnp.take(batch, rows))
    return fused_edge_forward(fp, x, rows, cols, ego,
                              tile_e_target=tile_e_target)


# ----------------------------------------------------------------------------
# Pure-JAX reference (mirrors the PyTorch forward in eval mode, unfused, f32)
# ----------------------------------------------------------------------------
def reference_forward(p, x, edge_index, batch, center_mask):
    PH = jax.lax.Precision.HIGHEST
    h = jnp.dot(x, p["wx"], precision=PH) + p["bx"]
    mu = h.mean(-1, keepdims=True)
    var = ((h - mu) ** 2).mean(-1, keepdims=True)
    node_embs = (h - mu) / jnp.sqrt(var + LN_EPS) * p["ln_g"] + p["ln_b"]
    rows, cols = edge_index[0], edge_index[1]
    row_e = jnp.dot(node_embs[rows], p["wr"], precision=PH) + p["br"]
    col_e = jnp.dot(node_embs[cols], p["wc"], precision=PH) + p["bc"]
    num_graphs = int(batch.max()) + 1
    center_idx = jnp.nonzero(center_mask, size=num_graphs)[0]
    center = node_embs[center_idx][batch[rows]]
    ego_e = jnp.dot(center, p["we"], precision=PH) + p["be"]
    edge = ego_e + row_e + col_e
    h0 = jnp.einsum("bi,kih->bkh", edge, p["w0"], precision=PH) + p["b0"]
    h0 = jax.nn.relu(h0 / jnp.sqrt(1.0 + BN_EPS))
    logits = jnp.einsum("bki,kih->bkh", h0, p["w1"], precision=PH) + p["b1"]
    return jax.nn.softmax(logits, axis=-1)[:, :, 1]


if __name__ == "__main__":
    key = jax.random.PRNGKey(0)
    N, E = 64, 128            # nodes, edges (2 graphs of 32 nodes each)
    NODE_X_DIM, HID_DIM = 16, 32

    ks = jax.random.split(key, 8)
    x = jax.random.normal(ks[0], (N, NODE_X_DIM), jnp.float32)
    batch = jnp.concatenate(
        [jnp.zeros((32,), jnp.int32), jnp.ones((32,), jnp.int32)])
    center_mask = jnp.zeros((N,), jnp.bool_).at[0].set(True).at[32].set(True)
    # edges restricted within each graph so edge_batch / center gather is valid
    rows = jnp.concatenate([jax.random.randint(ks[1], (E // 2,), 0, 32),
                            jax.random.randint(ks[2], (E // 2,), 32, 64)]).astype(jnp.int32)
    cols = jnp.concatenate([jax.random.randint(ks[3], (E // 2,), 0, 32),
                            jax.random.randint(ks[4], (E // 2,), 32, 64)]).astype(jnp.int32)
    edge_index = jnp.stack([rows, cols], axis=0)

    params = init_params(ks[5], NODE_X_DIM, HID_DIM)
    fused = fuse_params(params)        # one-time host-side weight fusion

    fwd = jax.jit(functools.partial(homo_struct_cftm_forward, num_graphs=2))
    crucial_mask = jax.block_until_ready(
        fwd(fused, x, edge_index, batch, center_mask))

    ref = reference_forward(params, x, edge_index, batch, center_mask)
    # bf16 MXU operands (f32 accumulate) vs HIGHEST-precision f32 reference:
    # expected max abs error ~1e-3; any structural/fusion bug would be O(0.1).
    np.testing.assert_allclose(np.asarray(crucial_mask), np.asarray(ref),
                               rtol=1e-2, atol=1e-2)
    assert crucial_mask.shape == (E, NUM_HEAD)
    print("KERNEL_OK")
</pallas_src>

<mosaic_0001>
module attributes {stable_mosaic.version = 11 : i64} {
  func.func @_fused_kernel(%arg0: i32, %arg1: memref<128x1xi32, #tpu.memory_space<vmem>>, %arg2: memref<128x1xi32, #tpu.memory_space<vmem>>, %arg3: memref<128x1xi32, #tpu.memory_space<vmem>>, %arg4: memref<64x16xf32, #tpu.memory_space<vmem>>, %arg5: memref<16x32xbf16, #tpu.memory_space<vmem>>, %arg6: memref<1x32xf32, #tpu.memory_space<vmem>>, %arg7: memref<1x32xf32, #tpu.memory_space<vmem>>, %arg8: memref<1x32xf32, #tpu.memory_space<vmem>>, %arg9: memref<3x32x128xbf16, #tpu.memory_space<vmem>>, %arg10: memref<1x128xf32, #tpu.memory_space<vmem>>, %arg11: memref<8x128xbf16, #tpu.memory_space<vmem>>, %arg12: memref<8x1xf32, #tpu.memory_space<vmem>>, %arg13: memref<8x128xf32, #tpu.memory_space<vmem>>, %arg14: memref<3x64x128xbf16, #tpu.memory_space<vmem>>) attributes {dimension_semantics = [#tpu.dimension_semantics<arbitrary>], iteration_bounds = array<i64: 1>, scalar_prefetch = 0 : i64, scratch_operands = 1 : i64, tpu.core_type = #tpu.core_type<tc>, window_params = [{transform_indices = @transform_0, window_bounds = array<i64: 128, 1>}, {transform_indices = @transform_1, window_bounds = array<i64: 128, 1>}, {transform_indices = @transform_2, window_bounds = array<i64: 128, 1>}, {pipeline_mode = #tpu.pipeline_mode<synchronous>, transform_indices = @transform_3, window_bounds = array<i64: 64, 16>}, {pipeline_mode = #tpu.pipeline_mode<synchronous>, transform_indices = @transform_4, window_bounds = array<i64: 16, 32>}, {pipeline_mode = #tpu.pipeline_mode<synchronous>, transform_indices = @transform_5, window_bounds = array<i64: 1, 32>}, {pipeline_mode = #tpu.pipeline_mode<synchronous>, transform_indices = @transform_6, window_bounds = array<i64: 1, 32>}, {pipeline_mode = #tpu.pipeline_mode<synchronous>, transform_indices = @transform_7, window_bounds = array<i64: 1, 32>}, {pipeline_mode = #tpu.pipeline_mode<synchronous>, transform_indices = @transform_8, window_bounds = array<i64: 3, 32, 128>}, {pipeline_mode = #tpu.pipeline_mode<synchronous>, transform_indices = @transform_9, window_bounds = array<i64: 1, 128>}, {pipeline_mode = #tpu.pipeline_mode<synchronous>, transform_indices = @transform_10, window_bounds = array<i64: 8, 128>}, {pipeline_mode = #tpu.pipeline_mode<synchronous>, transform_indices = @transform_11, window_bounds = array<i64: 8, 1>}, {transform_indices = @transform_12, window_bounds = array<i64: 8, 128>}]} {
    %c0_i32 = arith.constant 0 : i32
    %0 = arith.cmpi eq, %arg0, %c0_i32 : i32
    %1 = arith.extui %0 : i1 to i32
    %c0_i32_0 = arith.constant 0 : i32
    %2 = arith.cmpi ne, %1, %c0_i32_0 : i32
    scf.if %2 {
      %c0_26 = arith.constant 0 : index
      %c0_27 = arith.constant 0 : index
      %50 = vector.load %arg4[%c0_26, %c0_27] : memref<64x16xf32, #tpu.memory_space<vmem>>, vector<64x16xf32>
      %51 = arith.truncf %50 : vector<64x16xf32> to vector<64x16xbf16>
      %c0_28 = arith.constant 0 : index
      %c0_29 = arith.constant 0 : index
      %52 = vector.load %arg5[%c0_28, %c0_29] : memref<16x32xbf16, #tpu.memory_space<vmem>>, vector<16x32xbf16>
      %cst_30 = arith.constant dense<0.000000e+00> : vector<64x32xf32>
      %53 = tpu.matmul %51, %52, %cst_30 {dimension_numbers = #tpu.dot_dimension_numbers<[1], [0], [0], [1], [0, 0, 1, 1], [], []>} : vector<64x16xbf16>, vector<16x32xbf16>, vector<64x32xf32> -> vector<64x32xf32>
      %c0_31 = arith.constant 0 : index
      %c0_32 = arith.constant 0 : index
      %54 = vector.load %arg6[%c0_31, %c0_32] : memref<1x32xf32, #tpu.memory_space<vmem>>, vector<1x32xf32>
      %55 = vector.broadcast %54 : vector<1x32xf32> to vector<64x32xf32>
      %56 = arith.addf %53, %55 : vector<64x32xf32>
      %cst_33 = arith.constant dense<0.000000e+00> : vector<64xf32>
      %57 = vector.multi_reduction <add>, %56, %cst_33 [1] : vector<64x32xf32> to vector<64xf32>
      %58 = vector.shape_cast %57 : vector<64xf32> to vector<64x1xf32>
      %cst_34 = arith.constant 3.200000e+01 : f32
      %59 = vector.broadcast %cst_34 : f32 to vector<64x1xf32>
      %60 = arith.divf %58, %59 : vector<64x1xf32>
      %61 = arith.mulf %56, %56 : vector<64x32xf32>
      %cst_35 = arith.constant dense<0.000000e+00> : vector<64xf32>
      %62 = vector.multi_reduction <add>, %61, %cst_35 [1] : vector<64x32xf32> to vector<64xf32>
      %63 = vector.shape_cast %62 : vector<64xf32> to vector<64x1xf32>
      %cst_36 = arith.constant 3.200000e+01 : f32
      %64 = vector.broadcast %cst_36 : f32 to vector<64x1xf32>
      %65 = arith.divf %63, %64 : vector<64x1xf32>
      %66 = arith.mulf %60, %60 : vector<64x1xf32>
      %67 = arith.subf %65, %66 : vector<64x1xf32>
      %68 = vector.broadcast %60 : vector<64x1xf32> to vector<64x32xf32>
      %69 = arith.subf %56, %68 : vector<64x32xf32>
      %cst_37 = arith.constant 9.99999974E-6 : f32
      %70 = vector.broadcast %cst_37 : f32 to vector<64x1xf32>
      %71 = arith.addf %67, %70 : vector<64x1xf32>
      %72 = math.rsqrt %71 : vector<64x1xf32>
      %73 = vector.broadcast %72 : vector<64x1xf32> to vector<64x32xf32>
      %74 = arith.mulf %69, %73 : vector<64x32xf32>
      %c0_38 = arith.constant 0 : index
      %c0_39 = arith.constant 0 : index
      %75 = vector.load %arg7[%c0_38, %c0_39] : memref<1x32xf32, #tpu.memory_space<vmem>>, vector<1x32xf32>
      %76 = vector.broadcast %75 : vector<1x32xf32> to vector<64x32xf32>
      %77 = arith.mulf %74, %76 : vector<64x32xf32>
      %c0_40 = arith.constant 0 : index
      %c0_41 = arith.constant 0 : index
      %78 = vector.load %arg8[%c0_40, %c0_41] : memref<1x32xf32, #tpu.memory_space<vmem>>, vector<1x32xf32>
      %79 = vector.broadcast %78 : vector<1x32xf32> to vector<64x32xf32>
      %80 = arith.addf %77, %79 : vector<64x32xf32>
      %81 = arith.truncf %80 : vector<64x32xf32> to vector<64x32xbf16>
      %c0_42 = arith.constant 0 : index
      %c0_43 = arith.constant 0 : index
      %c0_44 = arith.constant 0 : index
      %82 = vector.load %arg9[%c0_42, %c0_43, %c0_44] : memref<3x32x128xbf16, #tpu.memory_space<vmem>>, vector<1x32x128xbf16>
      %83 = vector.shape_cast %82 : vector<1x32x128xbf16> to vector<32x128xbf16>
      %cst_45 = arith.constant dense<0.000000e+00> : vector<64x128xf32>
      %84 = tpu.matmul %81, %83, %cst_45 {dimension_numbers = #tpu.dot_dimension_numbers<[1], [0], [0], [1], [0, 0, 1, 1], [], []>} : vector<64x32xbf16>, vector<32x128xbf16>, vector<64x128xf32> -> vector<64x128xf32>
      %85 = arith.truncf %84 : vector<64x128xf32> to vector<64x128xbf16>
      %c0_46 = arith.constant 0 : index
      %c0_47 = arith.constant 0 : index
      %c0_48 = arith.constant 0 : index
      %86 = vector.load %arg14[%c0_46, %c0_47, %c0_48] : memref<3x64x128xbf16, #tpu.memory_space<vmem>>, vector<1x64x128xbf16>
      %87 = vector.shape_cast %86 : vector<1x64x128xbf16> to vector<64x128xbf16>
      %88 = vector.shape_cast %85 : vector<64x128xbf16> to vector<1x64x128xbf16>
      tpu.vector_store %arg14[%c0_46, %c0_47, %c0_48], %88 {strides = array<i32>} : memref<3x64x128xbf16, #tpu.memory_space<vmem>>, vector<1x64x128xbf16>,
      %c1_49 = arith.constant 1 : index
      %c0_50 = arith.constant 0 : index
      %c0_51 = arith.constant 0 : index
      %89 = vector.load %arg9[%c1_49, %c0_50, %c0_51] : memref<3x32x128xbf16, #tpu.memory_space<vmem>>, vector<1x32x128xbf16>
      %90 = vector.shape_cast %89 : vector<1x32x128xbf16> to vector<32x128xbf16>
      %cst_52 = arith.constant dense<0.000000e+00> : vector<64x128xf32>
      %91 = tpu.matmul %81, %90, %cst_52 {dimension_numbers = #tpu.dot_dimension_numbers<[1], [0], [0], [1], [0, 0, 1, 1], [], []>} : vector<64x32xbf16>, vector<32x128xbf16>, vector<64x128xf32> -> vector<64x128xf32>
      %92 = arith.truncf %91 : vector<64x128xf32> to vector<64x128xbf16>
      %c1_53 = arith.constant 1 : index
      %c0_54 = arith.constant 0 : index
      %c0_55 = arith.constant 0 : index
      %93 = vector.load %arg14[%c1_53, %c0_54, %c0_55] : memref<3x64x128xbf16, #tpu.memory_space<vmem>>, vector<1x64x128xbf16>
      %94 = vector.shape_cast %93 : vector<1x64x128xbf16> to vector<64x128xbf16>
      %95 = vector.shape_cast %92 : vector<64x128xbf16> to vector<1x64x128xbf16>
      tpu.vector_store %arg14[%c1_53, %c0_54, %c0_55], %95 {strides = array<i32>} : memref<3x64x128xbf16, #tpu.memory_space<vmem>>, vector<1x64x128xbf16>,
      %c2_56 = arith.constant 2 : index
      %c0_57 = arith.constant 0 : index
      %c0_58 = arith.constant 0 : index
      %96 = vector.load %arg9[%c2_56, %c0_57, %c0_58] : memref<3x32x128xbf16, #tpu.memory_space<vmem>>, vector<1x32x128xbf16>
      %97 = vector.shape_cast %96 : vector<1x32x128xbf16> to vector<32x128xbf16>
      %cst_59 = arith.constant dense<0.000000e+00> : vector<64x128xf32>
      %98 = tpu.matmul %81, %97, %cst_59 {dimension_numbers = #tpu.dot_dimension_numbers<[1], [0], [0], [1], [0, 0, 1, 1], [], []>} : vector<64x32xbf16>, vector<32x128xbf16>, vector<64x128xf32> -> vector<64x128xf32>
      %99 = arith.truncf %98 : vector<64x128xf32> to vector<64x128xbf16>
      %c2_60 = arith.constant 2 : index
      %c0_61 = arith.constant 0 : index
      %c0_62 = arith.constant 0 : index
      %100 = vector.load %arg14[%c2_60, %c0_61, %c0_62] : memref<3x64x128xbf16, #tpu.memory_space<vmem>>, vector<1x64x128xbf16>
      %101 = vector.shape_cast %100 : vector<1x64x128xbf16> to vector<64x128xbf16>
      %102 = vector.shape_cast %99 : vector<64x128xbf16> to vector<1x64x128xbf16>
      tpu.vector_store %arg14[%c2_60, %c0_61, %c0_62], %102 {strides = array<i32>} : memref<3x64x128xbf16, #tpu.memory_space<vmem>>, vector<1x64x128xbf16>,
    } else {
    }
    %3 = tpu.iota {dimensions = array<i32: 1>} : vector<128x64xi32>
    %c0 = arith.constant 0 : index
    %c0_1 = arith.constant 0 : index
    %4 = vector.load %arg1[%c0, %c0_1] : memref<128x1xi32, #tpu.memory_space<vmem>>, vector<128x1xi32>
    %5 = vector.broadcast %4 : vector<128x1xi32> to vector<128x64xi32>
    %6 = arith.cmpi eq, %5, %3 : vector<128x64xi32>
    %7 = arith.extui %6 : vector<128x64xi1> to vector<128x64xi32>
    %8 = arith.sitofp %7 : vector<128x64xi32> to vector<128x64xf32>
    %9 = arith.truncf %8 : vector<128x64xf32> to vector<128x64xbf16>
    %c0_2 = arith.constant 0 : index
    %c0_3 = arith.constant 0 : index
    %c0_4 = arith.constant 0 : index
    %10 = vector.load %arg14[%c0_2, %c0_3, %c0_4] : memref<3x64x128xbf16, #tpu.memory_space<vmem>>, vector<1x64x128xbf16>
    %11 = vector.shape_cast %10 : vector<1x64x128xbf16> to vector<64x128xbf16>
    %cst = arith.constant dense<0.000000e+00> : vector<128x128xf32>
    %12 = tpu.matmul %9, %11, %cst {dimension_numbers = #tpu.dot_dimension_numbers<[1], [0], [0], [1], [0, 0, 1, 1], [], []>} : vector<128x64xbf16>, vector<64x128xbf16>, vector<128x128xf32> -> vector<128x128xf32>
    %c0_5 = arith.constant 0 : index
    %c0_6 = arith.constant 0 : index
    %13 = vector.load %arg2[%c0_5, %c0_6] : memref<128x1xi32, #tpu.memory_space<vmem>>, vector<128x1xi32>
    %14 = vector.broadcast %13 : vector<128x1xi32> to vector<128x64xi32>
    %15 = arith.cmpi eq, %14, %3 : vector<128x64xi32>
    %16 = arith.extui %15 : vector<128x64xi1> to vector<128x64xi32>
    %17 = arith.sitofp %16 : vector<128x64xi32> to vector<128x64xf32>
    %18 = arith.truncf %17 : vector<128x64xf32> to vector<128x64xbf16>
    %c1 = arith.constant 1 : index
    %c0_7 = arith.constant 0 : index
    %c0_8 = arith.constant 0 : index
    %19 = vector.load %arg14[%c1, %c0_7, %c0_8] : memref<3x64x128xbf16, #tpu.memory_space<vmem>>, vector<1x64x128xbf16>
    %20 = vector.shape_cast %19 : vector<1x64x128xbf16> to vector<64x128xbf16>
    %cst_9 = arith.constant dense<0.000000e+00> : vector<128x128xf32>
    %21 = tpu.matmul %18, %20, %cst_9 {dimension_numbers = #tpu.dot_dimension_numbers<[1], [0], [0], [1], [0, 0, 1, 1], [], []>} : vector<128x64xbf16>, vector<64x128xbf16>, vector<128x128xf32> -> vector<128x128xf32>
    %22 = arith.addf %12, %21 : vector<128x128xf32>
    %c0_10 = arith.constant 0 : index
    %c0_11 = arith.constant 0 : index
    %23 = vector.load %arg3[%c0_10, %c0_11] : memref<128x1xi32, #tpu.memory_space<vmem>>, vector<128x1xi32>
    %24 = vector.broadcast %23 : vector<128x1xi32> to vector<128x64xi32>
    %25 = arith.cmpi eq, %24, %3 : vector<128x64xi32>
    %26 = arith.extui %25 : vector<128x64xi1> to vector<128x64xi32>
    %27 = arith.sitofp %26 : vector<128x64xi32> to vector<128x64xf32>
    %28 = arith.truncf %27 : vector<128x64xf32> to vector<128x64xbf16>
    %c2 = arith.constant 2 : index
    %c0_12 = arith.constant 0 : index
    %c0_13 = arith.constant 0 : index
    %29 = vector.load %arg14[%c2, %c0_12, %c0_13] : memref<3x64x128xbf16, #tpu.memory_space<vmem>>, vector<1x64x128xbf16>
    %30 = vector.shape_cast %29 : vector<1x64x128xbf16> to vector<64x128xbf16>
    %cst_14 = arith.constant dense<0.000000e+00> : vector<128x128xf32>
    %31 = tpu.matmul %28, %30, %cst_14 {dimension_numbers = #tpu.dot_dimension_numbers<[1], [0], [0], [1], [0, 0, 1, 1], [], []>} : vector<128x64xbf16>, vector<64x128xbf16>, vector<128x128xf32> -> vector<128x128xf32>
    %32 = arith.addf %22, %31 : vector<128x128xf32>
    %c0_15 = arith.constant 0 : index
    %c0_16 = arith.constant 0 : index
    %33 = vector.load %arg10[%c0_15, %c0_16] : memref<1x128xf32, #tpu.memory_space<vmem>>, vector<1x128xf32>
    %34 = vector.broadcast %33 : vector<1x128xf32> to vector<128x128xf32>
    %35 = arith.addf %32, %34 : vector<128x128xf32>
    %cst_17 = arith.constant 0.000000e+00 : f32
    %36 = vector.broadcast %cst_17 : f32 to vector<128x128xf32>
    %37 = arith.maximumf %35, %36 : vector<128x128xf32>
    %c0_18 = arith.constant 0 : index
    %c0_19 = arith.constant 0 : index
    %38 = vector.load %arg11[%c0_18, %c0_19] : memref<8x128xbf16, #tpu.memory_space<vmem>>, vector<8x128xbf16>
    %39 = arith.truncf %37 : vector<128x128xf32> to vector<128x128xbf16>
    %cst_20 = arith.constant dense<0.000000e+00> : vector<8x128xf32>
    %40 = tpu.matmul %38, %39, %cst_20 {dimension_numbers = #tpu.dot_dimension_numbers<[1], [1], [0], [0], [0, 0, 1, 0], [], []>} : vector<8x128xbf16>, vector<128x128xbf16>, vector<8x128xf32> -> vector<8x128xf32>
    %c0_21 = arith.constant 0 : index
    %c0_22 = arith.constant 0 : index
    %41 = vector.load %arg12[%c0_21, %c0_22] : memref<8x1xf32, #tpu.memory_space<vmem>>, vector<8x1xf32>
    %42 = vector.broadcast %41 : vector<8x1xf32> to vector<8x128xf32>
    %43 = arith.addf %40, %42 : vector<8x128xf32>
    %44 = arith.negf %43 : vector<8x128xf32>
    %45 = math.exp %44 : vector<8x128xf32>
    %cst_23 = arith.constant 1.000000e+00 : f32
    %46 = vector.broadcast %cst_23 : f32 to vector<8x128xf32>
    %47 = arith.addf %46, %45 : vector<8x128xf32>
    %48 = arith.divf %46, %47 : vector<8x128xf32>
    %c0_24 = arith.constant 0 : index
    %c0_25 = arith.constant 0 : index
    %49 = vector.load %arg13[%c0_24, %c0_25] : memref<8x128xf32, #tpu.memory_space<vmem>>, vector<8x128xf32>
    tpu.vector_store %arg13[%c0_24, %c0_25], %48 {strides = array<i32>} : memref<8x128xf32, #tpu.memory_space<vmem>>, vector<8x128xf32>,
    return
  }
  func.func @transform_0(%arg0: i32) -> (i32, i32) {
    %c0_i32 = arith.constant 0 : i32
    %c0_i32_0 = arith.constant 0 : i32
    return %arg0, %c0_i32 : i32, i32
  }
  func.func @transform_1(%arg0: i32) -> (i32, i32) {
    %c0_i32 = arith.constant 0 : i32
    %c0_i32_0 = arith.constant 0 : i32
    return %arg0, %c0_i32 : i32, i32
  }
  func.func @transform_2(%arg0: i32) -> (i32, i32) {
    %c0_i32 = arith.constant 0 : i32
    %c0_i32_0 = arith.constant 0 : i32
    return %arg0, %c0_i32 : i32, i32
  }
  func.func @transform_3(%arg0: i32) -> (i32, i32) {
    %c0_i32 = arith.constant 0 : i32
    %c0_i32_0 = arith.constant 0 : i32
    %c0_i32_1 = arith.constant 0 : i32
    return %c0_i32, %c0_i32_0 : i32, i32
  }
  func.func @transform_4(%arg0: i32) -> (i32, i32) {
    %c0_i32 = arith.constant 0 : i32
    %c0_i32_0 = arith.constant 0 : i32
    %c0_i32_1 = arith.constant 0 : i32
    return %c0_i32, %c0_i32_0 : i32, i32
  }
  func.func @transform_5(%arg0: i32) -> (i32, i32) {
    %c0_i32 = arith.constant 0 : i32
    %c0_i32_0 = arith.constant 0 : i32
    %c0_i32_1 = arith.constant 0 : i32
    return %c0_i32, %c0_i32_0 : i32, i32
  }
  func.func @transform_6(%arg0: i32) -> (i32, i32) {
    %c0_i32 = arith.constant 0 : i32
    %c0_i32_0 = arith.constant 0 : i32
    %c0_i32_1 = arith.constant 0 : i32
    return %c0_i32, %c0_i32_0 : i32, i32
  }
  func.func @transform_7(%arg0: i32) -> (i32, i32) {
    %c0_i32 = arith.constant 0 : i32
    %c0_i32_0 = arith.constant 0 : i32
    %c0_i32_1 = arith.constant 0 : i32
    return %c0_i32, %c0_i32_0 : i32, i32
  }
  func.func @transform_8(%arg0: i32) -> (i32, i32, i32) {
    %c0_i32 = arith.constant 0 : i32
    %c0_i32_0 = arith.constant 0 : i32
    %c0_i32_1 = arith.constant 0 : i32
    %c0_i32_2 = arith.constant 0 : i32
    return %c0_i32, %c0_i32_0, %c0_i32_1 : i32, i32, i32
  }
  func.func @transform_9(%arg0: i32) -> (i32, i32) {
    %c0_i32 = arith.constant 0 : i32
    %c0_i32_0 = arith.constant 0 : i32
    %c0_i32_1 = arith.constant 0 : i32
    return %c0_i32, %c0_i32_0 : i32, i32
  }
  func.func @transform_10(%arg0: i32) -> (i32, i32) {
    %c0_i32 = arith.constant 0 : i32
    %c0_i32_0 = arith.constant 0 : i32
    %c0_i32_1 = arith.constant 0 : i32
    return %c0_i32, %c0_i32_0 : i32, i32
  }
  func.func @transform_11(%arg0: i32) -> (i32, i32) {
    %c0_i32 = arith.constant 0 : i32
    %c0_i32_0 = arith.constant 0 : i32
    %c0_i32_1 = arith.constant 0 : i32
    return %c0_i32, %c0_i32_0 : i32, i32
  }
  func.func @transform_12(%arg0: i32) -> (i32, i32) {
    %c0_i32 = arith.constant 0 : i32
    %c0_i32_0 = arith.constant 0 : i32
    return %c0_i32, %arg0 : i32, i32
  }
}

</mosaic_0001>

<bundles_post_ra>
// kernel: homo_struct_cftm_forward.1
= control target key start
LH: loop header
LB: loop body
LE: loop exit
PB: predicated region body
PF: predicated region fallthrough
CT: control target
= control target key end

     0   :  { %vm70_vm0 = vcmask 130048   ;;  %vm112_vm1 = vcmask 261120   ;;  %v1619_v54 = vmov 32.0   ;;  %s2386_s4 = inlined_call_operand.vmem [shape: bf16[16,32], index: 4, kind: input, shape index: {}]   ;;  %s2387_s3 = inlined_call_operand.vmem [shape: f32[64,16], index: 3, kind: input, shape index: {}]   ;;  %s2388_s5 = inlined_call_operand.vmem [shape: f32[1,32], index: 5, kind: input, shape index: {}]   ;;  %s2389_s6 = inlined_call_operand.vmem [shape: f32[1,32], index: 6, kind: input, shape index: {}]   ;;  %s2390_s7 = inlined_call_operand.vmem [shape: f32[1,32], index: 7, kind: input, shape index: {}]   ;;  %s2391_s8 = inlined_call_operand.vmem [shape: bf16[3,32,128], index: 8, kind: input, shape index: {}]   ;;  %s2392_s2 = inlined_call_operand.vmem [shape: s32[128,1], index: 2, kind: input, shape index: {}]   ;;  %s2393_s1 = inlined_call_operand.vmem [shape: s32[128,1], index: 1, kind: input, shape index: {}]   ;;  %s2394_s0 = inlined_call_operand.vmem [shape: s32[128,1], index: 0, kind: input, shape index: {}]   ;;  %s2395_s11 = inlined_call_operand.vmem [shape: f32[8,1], index: 11, kind: input, shape index: {}]   ;;  %s2396_s9 = inlined_call_operand.vmem [shape: f32[1,128], index: 9, kind: input, shape index: {}]   ;;  %s2397_s10 = inlined_call_operand.vmem [shape: bf16[8,128], index: 10, kind: input, shape index: {}]   ;;  %s2398_s12 = inlined_call_operand.vmem [shape: f32[8,128], index: 12, kind: output, shape index: {}]  }
   0x1   :  { %v1496_v0 = vld [vmem:[%s2386_s4] sm:$0xff]  ;;  %v47_v2 = vld [vmem:[%s2387_s3 + $0x8] sm:$0xff]  ;;  %v52_v4 = vld [vmem:[%s2387_s3 + $0x30] sm:$0xff]  ;;  %1597 = vrcp.f32 %v1619_v54 }
   0x2   :  { %v46_v1 = vld [vmem:[%s2387_s3] sm:$0xff]  ;;  %90 = vmatpush.bf16.msra.mxu0 %v1496_v0  ;;  %1584 = vmatpush.bf16.msra.mxu2 %v1496_v0  ;;  %v53_v5 = vld [vmem:[%s2387_s3 + $0x38] sm:$0xff]  ;;  %v48_v7 = vld [vmem:[%s2387_s3 + $0x10] sm:$0xff] }
   0x3   :  { %v54_v3 = vpack.c.bf16 %v47_v2, %v46_v1  ;;  %v57_v6 = vpack.c.bf16 %v53_v5, %v52_v4  ;;  %v49_v8 = vld [vmem:[%s2387_s3 + $0x18] sm:$0xff]  ;;  %v50_v10 = vld [vmem:[%s2387_s3 + $0x20] sm:$0xff]  ;;  %v51_v11 = vld [vmem:[%s2387_s3 + $0x28] sm:$0xff] }
   0x4   :  { %v55_v9 = vpack.c.bf16 %v49_v8, %v48_v7  ;;  %v56_v12 = vpack.c.bf16 %v51_v11, %v50_v10  ;;  %v1593_v13 = vld [vmem:[%s2388_s5] ss:$0 sm:$0xff]  ;;  %v1498_v0 = vld [vmem:[%s2391_s8 + $0x8] sm:$0xff]  ;;  %v1500_v1 = vld [vmem:[%s2391_s8 + $0x18] sm:$0xff] }
   0x5   :  { %1327 = vmatmul.msk.bf16.vlgmr.msra.gmra.mxu0 %vm70_vm0, %v54_v3  ;;  %1330 = vmatmul.msk.bf16.vlgmr.msra.gmra.mxu2 %vm70_vm0, %v57_v6  ;;  %v1497_v5 = vld [vmem:[%s2391_s8] sm:$0xff]  ;;  %v1499_v6 = vld [vmem:[%s2391_s8 + $0x10] sm:$0xff] }
   0x6   :  { %374 = vmatpush.bf16.msra.mxu3 %v1498_v0  ;;  %436 = vmatpush.bf16.msra.mxu1 %v1500_v1  ;;  %v1502_v0 = vld [vmem:[%s2391_s8 + $0x28] sm:$0xff] }
   0x7   :  { %v1598_v55 = vpop.eup %1597  ;;  %1585 = vmatpush.bf16.msrb.mxu2 %v1500_v1 }
   0x8   :  { %v138_v56 = vmul.f32 32.0, %v1598_v55  ;;  %vm142_vm2 = vweird.f32 %v1598_v55 }
   0xa   :  { %v139_v57 = vsub.f32 1.0, %v138_v56  ;;  %375 = vmatpush.bf16.msra.mxu3 %v1497_v5  ;;  %437 = vmatpush.bf16.msra.mxu1 %v1499_v6 }
   0xb   :  { %1586 = vmatpush.bf16.msrb.mxu2 %v1499_v6 }
   0xc   :  { %v140_v58 = vmul.f32 %v1598_v55, %v139_v57 }
   0xe   :  { %v141_v59 = vadd.f32 %v1598_v55, %v140_v58  ;;  %499 = vmatpush.bf16.msrb.mxu3 %v1502_v0 }
  0x10   :  { %v1773_v60 = vsel %vm142_vm2, %v1598_v55, %v141_v59  ;;  %v1830_v55 = vld [vmem:[%s2389_s6] ss:$0 sm:$0xff] }
  0x15   :  { %1328 = vmatmul.msk.bf16.gmra.mxu0 %vm70_vm0, %v55_v9 }
  0x25   :  { %1329 = vmatmul.msk.bf16.gmra.mxu0 %vm70_vm0, %v56_v12 }
  0x82   :  { %v92_v14 = vpop.f32.mrf.mxu0 }
  0x83   :  { %v1717_v15 = vadd.f32 %v1593_v13, %v92_v14 }
  0x85   :  { %v113_v16 = vsel %vm112_vm1, %v1717_v15, 0.0  ;;  %v152_v17 = vmul.f32 %v1717_v15, %v1717_v15 }
  0x86   :  { %114 = vadd.xlane.f32.xlu0 %v113_v16 }
  0x87   :  { %v160_v18 = vsel %vm112_vm1, %v152_v17, 0.0 }
  0x88   :  { %161 = vadd.xlane.f32.xlu1 %v160_v18  ;;  %v107_v31 = vpop.f32.mrf.mxu2 }
  0x89   :  { %v1756_v44 = vadd.f32 %v1593_v13, %v107_v31 }
  0x8a   :  { %v94_v19 = vpop.f32.mrf.mxu0 }
  0x8b   :  { %v1724_v20 = vadd.f32 %v1593_v13, %v94_v19  ;;  %v158_v49 = vmul.f32 %v1756_v44, %v1756_v44  ;;  %v131_v50 = vsel %vm112_vm1, %v1756_v44, 0.0 }
  0x8d   :  { %v116_v21 = vsel %vm112_vm1, %v1724_v20, 0.0  ;;  %v153_v22 = vmul.f32 %v1724_v20, %v1724_v20  ;;  %v178_v51 = vsel %vm112_vm1, %v158_v49, 0.0 }
  0x8e   :  { %117 = vadd.xlane.f32.xlu0 %v116_v21 }
  0x8f   :  { %v163_v23 = vsel %vm112_vm1, %v153_v22, 0.0 }
  0x90   :  { %164 = vadd.xlane.f32.xlu1 %v163_v23  ;;  %v109_v39 = vpop.f32.mrf.mxu2 }
  0x91   :  { %v1752_v41 = vadd.f32 %v1593_v13, %v109_v39 }
  0x92   :  { %v97_v24 = vpop.f32.mrf.mxu0 }
  0x93   :  { %v1731_v25 = vadd.f32 %v1593_v13, %v97_v24  ;;  %v134_v47 = vsel %vm112_vm1, %v1752_v41, 0.0  ;;  %v159_v52 = vmul.f32 %v1752_v41, %v1752_v41 }
  0x95   :  { %v119_v26 = vsel %vm112_vm1, %v1731_v25, 0.0  ;;  %v154_v27 = vmul.f32 %v1731_v25, %v1731_v25  ;;  %v181_v53 = vsel %vm112_vm1, %v159_v52, 0.0 }
  0x96   :  { %120 = vadd.xlane.f32.xlu2 %v119_v26 }
  0x97   :  { %v166_v28 = vsel %vm112_vm1, %v154_v27, 0.0 }
  0x98   :  { %167 = vadd.xlane.f32.xlu0 %v166_v28 }
  0x9a   :  { %v99_v29 = vpop.f32.mrf.mxu0 }
  0x9b   :  { %v1738_v30 = vadd.f32 %v1593_v13, %v99_v29 }
  0x9d   :  { %v122_v32 = vsel %vm112_vm1, %v1738_v30, 0.0  ;;  %v155_v33 = vmul.f32 %v1738_v30, %v1738_v30 }
  0x9e   :  { %123 = vadd.xlane.f32.xlu2 %v122_v32 }
  0x9f   :  { %v169_v34 = vsel %vm112_vm1, %v155_v33, 0.0 }
  0xa0   :  { %170 = vadd.xlane.f32.xlu1 %v169_v34 }
  0xa2   :  { %v102_v35 = vpop.f32.mrf.mxu0 }
  0xa3   :  { %v1745_v36 = vadd.f32 %v1593_v13, %v102_v35 }
  0xa5   :  { %v125_v37 = vsel %vm112_vm1, %v1745_v36, 0.0  ;;  %v156_v38 = vmul.f32 %v1745_v36, %v1745_v36 }
  0xa6   :  { %126 = vadd.xlane.f32.xlu2 %v125_v37 }
  0xa7   :  { %v172_v40 = vsel %vm112_vm1, %v156_v38, 0.0 }
  0xa8   :  { %173 = vadd.xlane.f32.xlu1 %v172_v40 }
  0xaa   :  { %v104_v42 = vpop.f32.mrf.mxu0 }
  0xab   :  { %v1754_v43 = vadd.f32 %v1593_v13, %v104_v42 }
  0xad   :  { %v128_v45 = vsel %vm112_vm1, %v1754_v43, 0.0  ;;  %v157_v46 = vmul.f32 %v1754_v43, %v1754_v43 }
  0xae   :  { %129 = vadd.xlane.f32.xlu0 %v128_v45 }
  0xaf   :  { %v175_v48 = vsel %vm112_vm1, %v157_v46, 0.0 }
  0xb0   :  { %176 = vadd.xlane.f32.xlu2 %v175_v48  ;;  %135 = vadd.xlane.f32.xlu1 %v134_v47 }
  0xb6   :  { %132 = vadd.xlane.f32.xlu0 %v131_v50  ;;  %v1620_v50 = vmov 0  }
  0xb7   :  { %1590 = vset.pattern.permute.xlu1 %v1620_v50  ;;  %1592 = vset.pattern.permute.xlu0 %v1620_v50 }
  0xb8   :  { %179 = vadd.xlane.f32.xlu2 %v178_v51  ;;  %v993_v51 = vld [vmem:[%s2392_s2] sm:$0xff] }
  0xb9   :  { %1591 = vset.pattern.permute.xlu2 %v1620_v50 }
  0xbe   :  { %182 = vadd.xlane.f32.xlu0 %v181_v53 }
  0xc9   :  { %1010 = vperm.xlu1 %1590, %v993_v51  }
  0xf9   :  { %v115_v61 = vpop.xlane.xlu0 %114 }
  0xfa   :  { %v1776_v62 = vmul.f32 %v1773_v60, %v115_v61 }
  0xfb   :  { %v162_v63 = vpop.xlane.xlu1 %161 }
  0xfc   :  { %v192_v2 = vmul.f32 %v1776_v62, %v1776_v62  ;;  %v184_v3 = vmul.f32 %v162_v63, %v1773_v60  ;;  %v208_v47 = vsub.f32 %v1717_v15, %v1776_v62 }
  0xfe   :  { %v200_v4 = vsub.f32 %v184_v3, %v192_v2 }
 0x100   :  { %v216_v7 = vadd.f32 1e-05, %v200_v4  ;;  %v1850_v4 = vld [vmem:[%s2390_s7] ss:$0 sm:$0xff] }
 0x101   :  { %v118_v8 = vpop.xlane.xlu0 %117 }
 0x102   :  { %1599 = vrsqrt.f32 %v216_v7  ;;  %v1794_v9 = vmul.f32 %v1773_v60, %v118_v8  ;;  %vm230_vm4 = vweird.f32 %v216_v7 }
 0x103   :  { %v165_v10 = vpop.xlane.xlu1 %164 }
 0x104   :  { %v193_v11 = vmul.f32 %v1794_v9, %v1794_v9  ;;  %v185_v12 = vmul.f32 %v165_v10, %v1773_v60  ;;  %v209_v58 = vsub.f32 %v1724_v20, %v1794_v9  ;;  %v669_v9 = vld [vmem:[%s2393_s1] sm:$0xff] }
 0x105   :  { %686 = vperm.xlu1 %1590, %v669_v9   ;;  %v551_v9 = vld [vmem:[%s2394_s0 + $0x50] sm:$0xff] }
 0x106   :  { %v201_v13 = vsub.f32 %v185_v12, %v193_v11 }
 0x108   :  { %v1600_v14 = vpop.eup %1599  ;;  %v217_v16 = vadd.f32 1e-05, %v201_v13 }
 0x109   :  { %v225_v17 = vmul.f32 %v1600_v14, %v216_v7  ;;  %v121_v18 = vpop.xlane.xlu2 %120  ;;  %vm231_vm3 = vweird.f32 %v1600_v14 }
 0x10a   :  { %1601 = vrsqrt.f32 %v217_v16  ;;  %v1800_v19 = vmul.f32 %v1773_v60, %v121_v18  ;;  %vm1811_vm5 = vmor %vm230_vm4, %vm231_vm3  ;;  %vm240_vm7 = vweird.f32 %v217_v16 }
 0x10b   :  { %v226_v21 = vmul.f32 %v1600_v14, %v225_v17  ;;  %v168_v22 = vpop.xlane.xlu0 %167 }
 0x10c   :  { %v194_v23 = vmul.f32 %v1800_v19, %v1800_v19  ;;  %v186_v24 = vmul.f32 %v168_v22, %v1773_v60 }
 0x10d   :  { %v227_v26 = vmul.f32 0.5, %v226_v21 }
 0x10e   :  { %v202_v27 = vsub.f32 %v186_v24, %v194_v23 }
 0x10f   :  { %v228_v28 = vsub.f32 1.5, %v227_v26 }
 0x110   :  { %v1602_v29 = vpop.eup %1601  ;;  %v1805_v31 = vadd.f32 1e-05, %v202_v27 }
 0x111   :  { %v229_v32 = vmul.f32 %v1600_v14, %v228_v28  ;;  %v235_v33 = vmul.f32 %v1602_v29, %v217_v16  ;;  %v124_v34 = vpop.xlane.xlu2 %123  ;;  %vm241_vm6 = vweird.f32 %v1602_v29 }
 0x112   :  { %1603 = vrsqrt.f32 %v1805_v31  ;;  %v1809_v35 = vmul.f32 %v1773_v60, %v124_v34  ;;  %vm242_vm8 = vmor %vm240_vm7, %vm241_vm6  ;;  %vm250_vm10 = vweird.f32 %v1805_v31 }
 0x113   :  { %v236_v37 = vmul.f32 %v1602_v29, %v235_v33  ;;  %v171_v38 = vpop.xlane.xlu1 %170  ;;  %v233_v45 = vsel %vm1811_vm5, %v1600_v14, %v229_v32  ;;  %v995_v33 = vld [vmem:[%s2392_s2 + $0x10] sm:$0xff] }
 0x114   :  { %v195_v40 = vmul.f32 %v1809_v35, %v1809_v35  ;;  %v187_v42 = vmul.f32 %v171_v38, %v1773_v60  ;;  %v304_v54 = vmul.f32 %v233_v45, %v208_v47  ;;  %1016 = vperm.xlu1 %1590, %v995_v33   ;;  %v1501_v45 = vld [vmem:[%s2391_s8 + $0x20] sm:$0xff] }
 0x115   :  { %v237_v46 = vmul.f32 0.5, %v236_v37  ;;  %500 = vmatpush.bf16.msrb.mxu3 %v1501_v45 }
 0x116   :  { %v203_v48 = vsub.f32 %v187_v42, %v195_v40  ;;  %v316_v3 = vmul.f32 %v1830_v55, %v304_v54 }
 0x117   :  { %v238_v49 = vsub.f32 1.5, %v237_v46  ;;  %v994_v46 = vld [vmem:[%s2392_s2 + $0x8] sm:$0xff] }
 0x118   :  { %v1604_v52 = vpop.eup %1603  ;;  %v1825_v53 = vadd.f32 1e-05, %v203_v48  ;;  %v328_v12 = vadd.f32 %v1850_v4, %v316_v3  ;;  %1013 = vperm.xlu2 %1591, %v994_v46  }
 0x119   :  { %v239_v15 = vmul.f32 %v1602_v29, %v238_v49  ;;  %v245_v56 = vmul.f32 %v1604_v52, %v1805_v31  ;;  %v127_v57 = vpop.xlane.xlu2 %126  ;;  %vm251_vm9 = vweird.f32 %v1604_v52 }
 0x11a   :  { %1605 = vrsqrt.f32 %v1825_v53  ;;  %v1838_v59 = vmul.f32 %v1773_v60, %v127_v57  ;;  %vm252_vm11 = vmor %vm250_vm10, %vm251_vm9  ;;  %vm260_vm13 = vweird.f32 %v1825_v53 }
 0x11b   :  { %v243_v61 = vsel %vm242_vm8, %v1602_v29, %v239_v15  ;;  %v246_v62 = vmul.f32 %v1604_v52, %v245_v56  ;;  %v174_v63 = vpop.xlane.xlu1 %173  ;;  %v210_v29 = vsub.f32 %v1731_v25, %v1800_v19  ;;  %v211_v19 = vsub.f32 %v1738_v30, %v1809_v35  ;;  %v541_v30 = vld [vmem:[%s2394_s0] sm:$0xff]  ;;  %v543_v15 = vld [vmem:[%s2394_s0 + $0x10] sm:$0xff] }
 0x11c   :  { %v196_v1 = vmul.f32 %v1838_v59, %v1838_v59  ;;  %v188_v2 = vmul.f32 %v174_v63, %v1773_v60  ;;  %v305_v20 = vmul.f32 %v243_v61, %v209_v58  ;;  %558 = vperm.xlu0 %1592, %v541_v30   ;;  %564 = vperm.xlu1 %1590, %v543_v15   ;;  %v996_v30 = vld [vmem:[%s2392_s2 + $0x18] sm:$0xff] }
 0x11d   :  { %v247_v5 = vmul.f32 0.5, %v246_v62 }
 0x11e   :  { %v204_v6 = vsub.f32 %v188_v2, %v196_v1  ;;  %v317_v7 = vmul.f32 %v1830_v55, %v305_v20 }
 0x11f   :  { %v248_v8 = vsub.f32 1.5, %v247_v5 }
 0x120   :  { %v1606_v10 = vpop.eup %1605  ;;  %v1856_v11 = vadd.f32 1e-05, %v204_v6  ;;  %v329_v13 = vadd.f32 %v1850_v4, %v317_v7 }
 0x121   :  { %v249_v14 = vmul.f32 %v1604_v52, %v248_v8  ;;  %v255_v16 = vmul.f32 %v1606_v10, %v1825_v53  ;;  %v130_v17 = vpop.xlane.xlu0 %129  ;;  %vm261_vm12 = vweird.f32 %v1606_v10 }
 0x122   :  { %1607 = vrsqrt.f32 %v1856_v11  ;;  %v1863_v18 = vmul.f32 %v1773_v60, %v130_v17  ;;  %v1865_v21 = vpack.c.bf16 %v329_v13, %v328_v12  ;;  %vm262_vm14 = vmor %vm260_vm13, %vm261_vm12  ;;  %vm270_vm0 = vweird.f32 %v1856_v11  ;;  %v542_v12 = vld [vmem:[%s2394_s0 + $0x8] sm:$0xff] }
 0x123   :  { %v256_v22 = vmul.f32 %v1606_v10, %v255_v16  ;;  %v177_v23 = vpop.xlane.xlu2 %176  ;;  %v253_v27 = vsel %vm252_vm11, %v1604_v52, %v249_v14  ;;  %v136_v54 = vpop.xlane.xlu1 %135  ;;  %v672_v14 = vld [vmem:[%s2393_s1 + $0x18] sm:$0xff]  ;;  %561 = vperm.xlu2 %1591, %v542_v12   ;;  %v212_v16 = vsub.f32 %v1745_v36, %v1838_v59  ;;  %v670_v36 = vld [vmem:[%s2393_s1 + $0x8] sm:$0xff] }
 0x124   :  { %v197_v24 = vmul.f32 %v1863_v18, %v1863_v18  ;;  %v189_v26 = vmul.f32 %v177_v23, %v1773_v60  ;;  %1339 = vmatmul.msk.bf16.vlgmr.msra.gmra.mxu3 %vm112_vm1, %v1865_v21  ;;  %1355 = vmatmul.msk.bf16.vlgmr.msra.gmra.mxu1 %vm112_vm1, %v1865_v21  ;;  %v306_v38 = vmul.f32 %v253_v27, %v210_v29  ;;  %v552_v12 = vld [vmem:[%s2394_s0 + $0x58] sm:$0xff] }
 0x125   :  { %v257_v28 = vmul.f32 0.5, %v256_v22  ;;  %v1912_v62 = vmul.f32 %v1773_v60, %v136_v54  ;;  %695 = vperm.xlu1 %1590, %v672_v14   ;;  %v682_v14 = vld [vmem:[%s2393_s1 + $0x68] sm:$0xff] }
 0x126   :  { %v205_v31 = vsub.f32 %v189_v26, %v197_v24  ;;  %v318_v52 = vmul.f32 %v1830_v55, %v306_v38 }
 0x127   :  { %v258_v32 = vsub.f32 1.5, %v257_v28  ;;  %v199_v5 = vmul.f32 %v1912_v62, %v1912_v62  ;;  %v213_v28 = vsub.f32 %v1754_v43, %v1863_v18 }
 0x128   :  { %v1880_v34 = vpop.eup %1607  ;;  %v1882_v37 = vadd.f32 1e-05, %v205_v31  ;;  %v330_v0 = vadd.f32 %v1850_v4, %v318_v52  ;;  %v997_v31 = vld [vmem:[%s2392_s2 + $0x20] sm:$0xff]  ;;  %v215_v52 = vsub.f32 %v1752_v41, %v1912_v62  ;;  %v547_v41 = vld [vmem:[%s2394_s0 + $0x30] sm:$0xff] }
 0x129   :  { %v259_v39 = vmul.f32 %v1606_v10, %v258_v32  ;;  %v265_v40 = vmul.f32 %v1880_v34, %v1856_v11  ;;  %v133_v25 = vpop.xlane.xlu0 %132  ;;  %vm271_vm15 = vweird.f32 %v1880_v34 }
 0x12a   :  { %1609 = vrsqrt.f32 %v1882_v37  ;;  %v1891_v42 = vmul.f32 %v1773_v60, %v133_v25  ;;  %vm1925_vm2 = vmor %vm270_vm0, %vm271_vm15  ;;  %vm280_vm4 = vweird.f32 %v1882_v37 }
 0x12b   :  { %v263_v47 = vsel %vm262_vm14, %v1606_v10, %v259_v39  ;;  %v266_v48 = vmul.f32 %v1880_v34, %v265_v40  ;;  %v180_v49 = vpop.xlane.xlu2 %179  ;;  %689 = vperm.xlu2 %1591, %v670_v36   ;;  %v1007_v36 = vld [vmem:[%s2392_s2 + $0x70] sm:$0xff] }
 0x12c   :  { %v198_v35 = vmul.f32 %v1891_v42, %v1891_v42  ;;  %v190_v50 = vmul.f32 %v180_v49, %v1773_v60  ;;  %v307_v51 = vmul.f32 %v263_v47, %v211_v19  ;;  %v214_v49 = vsub.f32 %v1756_v44, %v1891_v42  ;;  %v674_v44 = vld [vmem:[%s2393_s1 + $0x28] sm:$0xff] }
 0x12d   :  { %v267_v53 = vmul.f32 0.5, %v266_v48 }
 0x12e   :  { %v206_v56 = vsub.f32 %v190_v50, %v198_v35  ;;  %v319_v57 = vmul.f32 %v1830_v55, %v307_v51  ;;  %v546_v35 = vld [vmem:[%s2394_s0 + $0x28] sm:$0xff] }
 0x12f   :  { %v268_v58 = vsub.f32 1.5, %v267_v53 }
 0x130   :  { %v1610_v61 = vpop.eup %1609  ;;  %v222_v63 = vadd.f32 1e-05, %v206_v56  ;;  %v331_v1 = vadd.f32 %v1850_v4, %v319_v57  ;;  %v671_v56 = vld [vmem:[%s2393_s1 + $0x10] sm:$0xff] }
 0x131   :  { %v269_v2 = vmul.f32 %v1880_v34, %v268_v58  ;;  %v275_v20 = vmul.f32 %v1610_v61, %v1882_v37  ;;  %v183_v3 = vpop.xlane.xlu0 %182  ;;  %vm281_vm3 = vweird.f32 %v1610_v61  ;;  %v545_v37 = vld [vmem:[%s2394_s0 + $0x20] sm:$0xff]  ;;  %v999_v57 = vld [vmem:[%s2392_s2 + $0x30] sm:$0xff] }
 0x132   :  { %1611 = vrsqrt.f32 %v222_v63  ;;  %v191_v6 = vmul.f32 %v183_v3, %v1773_v60  ;;  %v1922_v7 = vpack.c.bf16 %v331_v1, %v330_v0  ;;  %v544_v60 = vld [vmem:[%s2394_s0 + $0x18] sm:$0xff]  ;;  %vm282_vm5 = vmor %vm280_vm4, %vm281_vm3  ;;  %570 = vperm.xlu1 %1590, %v545_v37   ;;  %vm290_vm7 = vweird.f32 %v222_v63  ;;  %v673_v1 = vld [vmem:[%s2393_s1 + $0x20] sm:$0xff] }
 0x133   :  { %v276_v8 = vmul.f32 %v1610_v61, %v275_v20  ;;  %v273_v11 = vsel %vm1925_vm2, %v1880_v34, %v269_v2  ;;  %567 = vperm.xlu0 %1592, %v544_v60   ;;  %1019 = vperm.xlu2 %1591, %v996_v30   ;;  %v548_v0 = vld [vmem:[%s2394_s0 + $0x38] sm:$0xff]  ;;  %v1001_v2 = vld [vmem:[%s2392_s2 + $0x40] sm:$0xff] }
 0x134   :  { %v207_v10 = vsub.f32 %v191_v6, %v199_v5  ;;  %1340 = vmatmul.msk.bf16.gmra.mxu3 %vm112_vm1, %v1922_v7  ;;  %1356 = vmatmul.msk.bf16.gmra.mxu1 %vm112_vm1, %v1922_v7  ;;  %v308_v24 = vmul.f32 %v273_v11, %v212_v16  ;;  %v549_v20 = vld [vmem:[%s2394_s0 + $0x40] sm:$0xff]  ;;  %v1000_v3 = vld [vmem:[%s2392_s2 + $0x38] sm:$0xff]  ;;  %v550_v5 = vld [vmem:[%s2394_s0 + $0x48] sm:$0xff] }
 0x135   :  { %v277_v13 = vmul.f32 0.5, %v276_v8  ;;  %v678_v6 = vld [vmem:[%s2393_s1 + $0x48] sm:$0xff]  ;;  %v675_v8 = vld [vmem:[%s2393_s1 + $0x30] sm:$0xff]  ;;  %v680_v60 = vld [vmem:[%s2393_s1 + $0x58] sm:$0xff] }
 0x136   :  { %v223_v17 = vadd.f32 1e-05, %v207_v10  ;;  %v320_v33 = vmul.f32 %v1830_v55, %v308_v24  ;;  %v1002_v10 = vld [vmem:[%s2392_s2 + $0x48] sm:$0xff]  ;;  %v677_v11 = vld [vmem:[%s2393_s1 + $0x40] sm:$0xff]  ;;  %v1004_v16 = vld [vmem:[%s2392_s2 + $0x58] sm:$0xff]  ;;  %v539_v24 = vlaneseq }
 0x137   :  { %v278_v22 = vsub.f32 1.5, %v277_v13  ;;  %v553_v13 = vld [vmem:[%s2394_s0 + $0x60] sm:$0xff]  ;;  %v684_v37 = vld [vmem:[%s2393_s1 + $0x78] sm:$0xff] }
 0x138   :  { %v1612_v23 = vpop.eup %1611  ;;  %1613 = vrsqrt.f32 %v223_v17  ;;  %v332_v40 = vadd.f32 %v1850_v4, %v320_v33  ;;  %vm300_vm10 = vweird.f32 %v223_v17  ;;  %v1008_v30 = vld [vmem:[%s2392_s2 + $0x78] sm:$0xff] }
 0x139   :  { %v279_v26 = vmul.f32 %v1610_v61, %v278_v22  ;;  %v285_v27 = vmul.f32 %v1612_v23, %v222_v63  ;;  %vm291_vm6 = vweird.f32 %v1612_v23 }
 0x13a   :  { %vm292_vm8 = vmor %vm290_vm7, %vm291_vm6  ;;  %701 = vperm.xlu1 %1590, %v674_v44  }
 0x13b   :  { %v283_v59 = vsel %vm282_vm5, %v1610_v61, %v279_v26  ;;  %v286_v29 = vmul.f32 %v1612_v23, %v285_v27  ;;  %1022 = vperm.xlu0 %1592, %v997_v31   ;;  %692 = vperm.xlu2 %1591, %v671_v56   ;;  %v2070_v26 = vand.u32 127, %v539_v24  ;;  %v555_v27 = vld [vmem:[%s2394_s0 + $0x70] sm:$0xff] }
 0x13c   :  { %v309_v32 = vmul.f32 %v283_v59, %v213_v28  ;;  %v679_v28 = vld [vmem:[%s2393_s1 + $0x50] sm:$0xff]  ;;  %v1621_v59 = vmov 0.0  }
 0x13d   :  { %v287_v34 = vmul.f32 0.5, %v286_v29 }
 0x13e   :  { %v1614_v43 = vpop.eup %1613  ;;  %v321_v18 = vmul.f32 %v1830_v55, %v309_v32 }
 0x13f   :  { %v288_v38 = vsub.f32 1.5, %v287_v34  ;;  %v295_v39 = vmul.f32 %v1614_v43, %v223_v17  ;;  %vm301_vm9 = vweird.f32 %v1614_v43  ;;  %v554_v17 = vld [vmem:[%s2394_s0 + $0x68] sm:$0xff] }
 0x140   :  { %v333_v25 = vadd.f32 %v1850_v4, %v321_v18  ;;  %vm302_vm11 = vmor %vm300_vm10, %vm301_vm9  ;;  %v556_v18 = vld [vmem:[%s2394_s0 + $0x78] sm:$0xff] }
 0x141   :  { %v289_v19 = vmul.f32 %v1612_v23, %v288_v38  ;;  %v296_v45 = vmul.f32 %v1614_v43, %v295_v39 }
 0x142   :  { %v1963_v46 = vpack.c.bf16 %v333_v25, %v332_v40  ;;  %576 = vperm.xlu1 %1590, %v547_v41   ;;  %v681_v40 = vld [vmem:[%s2393_s1 + $0x60] sm:$0xff] }
 0x143   :  { %v293_v47 = vsel %vm292_vm8, %v1612_v23, %v289_v19  ;;  %v297_v48 = vmul.f32 0.5, %v296_v45  ;;  %573 = vperm.xlu0 %1592, %v546_v35   ;;  %v1011_v23 = vpop.permute.xlu1 %1010  ;;  %v1280_v35 = vld [vmem:[%s2395_s11] sm:$0xff] }
 0x144   :  { %1341 = vmatmul.msk.bf16.gmra.mxu3 %vm112_vm1, %v1963_v46  ;;  %1357 = vmatmul.msk.bf16.gmra.mxu1 %vm112_vm1, %v1963_v46  ;;  %v310_v42 = vmul.f32 %v293_v47, %v214_v49  ;;  %vm1057_vm13 = vcmp.eq.s32.totalorder %v1011_v23, %v2070_v26 }
 0x145   :  { %v298_v50 = vsub.f32 1.5, %v297_v48  ;;  %v2087_v31 = vsel %vm1057_vm13, 1.0, %v1621_v59 }
 0x146   :  { %v322_v15 = vmul.f32 %v1830_v55, %v310_v42 }
 0x147   :  { %v299_v51 = vmul.f32 %v1614_v43, %v298_v50 }
 0x148   :  { %v334_v61 = vadd.f32 %v1850_v4, %v322_v15 }
 0x149   :  { %v303_v53 = vsel %vm302_vm11, %v1614_v43, %v299_v51  ;;  %v1006_v43 = vld [vmem:[%s2392_s2 + $0x68] sm:$0xff] }
 0x14a   :  { %v311_v54 = vmul.f32 %v303_v53, %v215_v52  ;;  %v683_v53 = vld [vmem:[%s2393_s1 + $0x70] sm:$0xff] }
 0x14b   :  { %1028 = vperm.xlu0 %1592, %v999_v57  }
 0x14c   :  { %v323_v58 = vmul.f32 %v1830_v55, %v311_v54  ;;  %v998_v55 = vld [vmem:[%s2392_s2 + $0x28] sm:$0xff] }
 0x14d   :  { %1025 = vperm.xlu2 %1591, %v998_v55  }
 0x14e   :  { %v335_v62 = vadd.f32 %v1850_v4, %v323_v58  ;;  %v676_v4 = vld [vmem:[%s2393_s1 + $0x38] sm:$0xff] }
 0x14f   :  { %707 = vperm.xlu1 %1590, %v676_v4  }
 0x150   :  { %v1995_v63 = vpack.c.bf16 %v335_v62, %v334_v61 }
 0x152   :  { %1358 = vmatmul.msk.bf16.vlgmr.msrb.gmra.mxu2 %vm112_vm1, %v1995_v63 }
 0x153   :  { %579 = vperm.xlu0 %1592, %v548_v0  }
 0x154   :  { %1342 = vmatmul.msk.bf16.gmra.mxu3 %vm112_vm1, %v1995_v63 }
 0x155   :  { %698 = vperm.xlu2 %1591, %v673_v1  }
 0x157   :  { %582 = vperm.xlu1 %1590, %v549_v20  }
 0x15b   :  { %1034 = vperm.xlu0 %1592, %v1001_v2  }
 0x15d   :  { %1031 = vperm.xlu2 %1591, %v1000_v3  }
 0x15f   :  { %713 = vperm.xlu1 %1590, %v678_v6  }
 0x163   :  { %585 = vperm.xlu0 %1592, %v550_v5  }
 0x164   :  { %1371 = vmatmul.msk.bf16.vlgmr.msrb.gmra.mxu3 %vm112_vm1, %v1865_v21  ;;  %v1003_v21 = vld [vmem:[%s2392_s2 + $0x50] sm:$0xff] }
 0x165   :  { %704 = vperm.xlu2 %1591, %v675_v8  }
 0x167   :  { %588 = vperm.xlu1 %1590, %v551_v9  }
 0x16b   :  { %1040 = vperm.xlu0 %1592, %v1003_v21  }
 0x16d   :  { %1037 = vperm.xlu2 %1591, %v1002_v10  }
 0x16f   :  { %719 = vperm.xlu1 %1590, %v680_v60  }
 0x172   :  { %v1014_v22 = vpop.permute.xlu2 %1013 }
 0x173   :  { %591 = vperm.xlu0 %1592, %v552_v12   ;;  %vm1058_vm12 = vcmp.eq.s32.totalorder %v1014_v22, %v2070_v26 }
 0x174   :  { %1372 = vmatmul.msk.bf16.gmra.mxu3 %vm112_vm1, %v1922_v7  ;;  %v1005_v7 = vld [vmem:[%s2392_s2 + $0x60] sm:$0xff]  ;;  %v2084_v29 = vsel %vm1058_vm12, 1.0, %v1621_v59 }
 0x175   :  { %710 = vperm.xlu2 %1591, %v677_v11   ;;  %v1105_v33 = vpack.c.bf16 %v2084_v29, %v2087_v31 }
 0x177   :  { %594 = vperm.xlu1 %1590, %v553_v13   ;;  %v2095_v34 = vpop.permute.xlu1 %686 }
 0x178   :  { %vm733_vm8 = vcmp.eq.s32.totalorder %v2095_v34, %v2070_v26 }
 0x17b   :  { %1046 = vperm.xlu0 %1592, %v1005_v7  }
 0x17d   :  { %1043 = vperm.xlu2 %1591, %v1004_v16   ;;  %v2089_v32 = vpop.permute.xlu2 %561 }
 0x17e   :  { %vm606_vm10 = vcmp.eq.s32.totalorder %v2089_v32, %v2070_v26 }
 0x17f   :  { %725 = vperm.xlu1 %1590, %v682_v14  }
 0x183   :  { %597 = vperm.xlu0 %1592, %v554_v17  }
 0x184   :  { %1373 = vmatmul.msk.bf16.gmra.mxu3 %vm112_vm1, %v1963_v46 }
 0x185   :  { %716 = vperm.xlu2 %1591, %v679_v28   ;;  %v2106_v38 = vpop.permute.xlu2 %689 }
 0x186   :  { %v1017_v39 = vpop.permute.xlu1 %1016  ;;  %vm734_vm9 = vcmp.eq.s32.totalorder %v2106_v38, %v2070_v26  ;;  %v1376_v38 = vsel %vm606_vm10, 1.0, %v1621_v59 }
 0x187   :  { %600 = vperm.xlu1 %1590, %v555_v27  }
 0x18b   :  { %1052 = vperm.xlu0 %1592, %v1007_v36  }
 0x18d   :  { %1049 = vperm.xlu2 %1591, %v1006_v43   ;;  %v1020_v45 = vpop.permute.xlu2 %1019 }
 0x18e   :  { %v2115_v46 = vpop.permute.xlu0 %558  ;;  %vm1060_vm14 = vcmp.eq.s32.totalorder %v1020_v45, %v2070_v26  ;;  %v2174_v28 = vpop.permute.xlu1 %564 }
 0x18f   :  { %731 = vperm.xlu1 %1590, %v684_v37   ;;  %v2119_v47 = vsel %vm1060_vm14, 1.0, %v1621_v59  ;;  %vm605_vm11 = vcmp.eq.s32.totalorder %v2115_v46, %v2070_v26 }
 0x193   :  { %603 = vperm.xlu0 %1592, %v556_v18  }
 0x194   :  { %1374 = vmatmul.msk.bf16.gmra.mxu3 %vm112_vm1, %v1995_v63  ;;  %vm1059_vm1 = vcmp.eq.s32.totalorder %v1017_v39, %v2070_v26 }
 0x195   :  { %722 = vperm.xlu2 %1591, %v681_v40   ;;  %v2113_v19 = vsel %vm1059_vm1, 1.0, %v1621_v59  ;;  %v2129_v42 = vpop.permute.xlu2 %692  ;;  %vm822_vm1 = vcmask 523264  }
 0x196   :  { %v1106_v48 = vpack.c.bf16 %v2119_v47, %v2113_v19 }
 0x19b   :  { %1283 = vperm.xlu0 %1592, %v1280_v35  }
 0x19d   :  { %1055 = vperm.xlu2 %1591, %v1008_v30  }
 0x1a1   :  { %v439_v25 = vpop.f32.mrf.mxu1 }
 0x1a5   :  { %v2131_v51 = vpop.permute.xlu0 %567  ;;  %728 = vperm.xlu2 %1591, %v683_v53  }
 0x1a7   :  { %v377_v49 = vpop.f32.mrf.mxu3  ;;  %v1026_v56 = vpop.permute.xlu2 %1025 }
 0x1a8   :  { %vm1062_vm15 = vcmp.eq.s32.totalorder %v1026_v56, %v2070_v26 }
 0x1a9   :  { %v441_v50 = vpop.f32.mrf.mxu1  ;;  %v2139_v58 = vsel %vm1062_vm15, 1.0, %v1621_v59  ;;  %vm735_vm15 = vcmp.eq.s32.totalorder %v2129_v42, %v2070_v26 }
 0x1aa   :  { %v1538_v44 = vpack.c.bf16 %v441_v50, %v439_v25 }
 0x1ac   :  { %1539 = vst [vmem:[#allocation2 + $0x50] sm:$0xff] %v1538_v44  }
 0x1ad   :  { %v1023_v57 = vpop.permute.xlu0 %1022 }
 0x1ae   :  { %vm1061_vm0 = vcmp.eq.s32.totalorder %v1023_v57, %v2070_v26 }
 0x1af   :  { %v379_v52 = vpop.f32.mrf.mxu3  ;;  %v2142_v41 = vsel %vm1061_vm0, 1.0, %v1621_v59  ;;  %v2146_v0 = vpop.permute.xlu2 %698  ;;  %vm607_vm0 = vcmp.eq.s32.totalorder %v2174_v28, %v2070_v26 }
 0x1b0   :  { %v1518_v54 = vpack.c.bf16 %v379_v52, %v377_v49  ;;  %v1107_v61 = vpack.c.bf16 %v2139_v58, %v2142_v41  ;;  %v696_v49 = vpop.permute.xlu1 %695 }
 0x1b1   :  { %v444_v15 = vpop.f32.mrf.mxu1  ;;  %vm736_vm14 = vcmp.eq.s32.totalorder %v696_v49, %v2070_v26 }
 0x1b2   :  { %1519 = vst [vmem:[#allocation2 + $0x30] sm:$0xff] %v1518_v54  }
 0x1b5   :  { %v2148_v4 = vpop.permute.xlu0 %573 }
 0x1b7   :  { %v382_v62 = vpop.f32.mrf.mxu3  ;;  %v1032_v3 = vpop.permute.xlu2 %1031 }
 0x1b8   :  { %vm1064_vm2 = vcmp.eq.s32.totalorder %v1032_v3, %v2070_v26  ;;  %v1375_v3 = vsel %vm605_vm11, 1.0, %v1621_v59 }
 0x1b9   :  { %v446_v63 = vpop.f32.mrf.mxu1  ;;  %v2153_v6 = vsel %vm1064_vm2, 1.0, %v1621_v59  ;;  %v1503_v46 = vld [vmem:[#allocation2 + $0x30] sm:$0xff]  ;;  %vm608_vm2 = vcmp.eq.s32.totalorder %v2131_v51, %v2070_v26 }
 0x1ba   :  { %v1543_v55 = vpack.c.bf16 %v446_v63, %v444_v15  ;;  %v1378_v49 = vsel %vm608_vm2, 1.0, %v1621_v59 }
 0x1bc   :  { %1578 = vst [vmem:[#allocation2 + $0x20] sm:$0xff] %v1543_v55  }
 0x1bd   :  { %v1029_v5 = vpop.permute.xlu0 %1028 }
 0x1be   :  { %vm1063_vm3 = vcmp.eq.s32.totalorder %v1029_v5, %v2070_v26  ;;  %v1507_v5 = vld [vmem:[#allocation2 + $0x50] sm:$0xff] }
 0x1bf   :  { %v384_v1 = vpop.f32.mrf.mxu3  ;;  %v2156_v8 = vsel %vm1063_vm3, 1.0, %v1621_v59  ;;  %v2160_v60 = vpop.permute.xlu2 %704 }
 0x1c0   :  { %v1523_v2 = vpack.c.bf16 %v384_v1, %v382_v62  ;;  %v1108_v21 = vpack.c.bf16 %v2153_v6, %v2156_v8  ;;  %v2198_v62 = vpop.permute.xlu1 %570  ;;  %vm739_vm10 = vcmp.eq.s32.totalorder %v2160_v60, %v2070_v26 }
 0x1c1   :  { %v449_v20 = vpop.f32.mrf.mxu1 }
 0x1c2   :  { %1575 = vst [vmem:[#allocation2] sm:$0xff] %v1523_v2   ;;  %v1391_v2 = vsel %vm733_vm8, 1.0, %v1621_v59  ;;  %vm610_vm8 = vcmp.eq.s32.totalorder %v2148_v4, %v2070_v26 }
 0x1c3   :  { %v1508_v55 = vld [vmem:[#allocation2 + $0x20] sm:$0xff] }
 0x1c5   :  { %v2162_v11 = vpop.permute.xlu0 %579 }
 0x1c7   :  { %v387_v9 = vpop.f32.mrf.mxu3  ;;  %v1038_v14 = vpop.permute.xlu2 %1037 }
 0x1c8   :  { %vm1066_vm4 = vcmp.eq.s32.totalorder %v1038_v14, %v2070_v26 }
 0x1c9   :  { %v451_v10 = vpop.f32.mrf.mxu1  ;;  %v2167_v22 = vsel %vm1066_vm4, 1.0, %v1621_v59  ;;  %v1504_v34 = vld [vmem:[#allocation2] sm:$0xff] }
 0x1ca   :  { %v1548_v12 = vpack.c.bf16 %v451_v10, %v449_v20  ;;  %v1392_v20 = vsel %vm734_vm9, 1.0, %v1621_v59 }
 0x1cb   :  { %v781_v32 = vpack.c.bf16 %v1392_v20, %v1391_v2 }
 0x1cc   :  { %1579 = vst [vmem:[#allocation2 + $0x8] sm:$0xff] %v1548_v12  }
 0x1cd   :  { %v1035_v16 = vpop.permute.xlu0 %1034 }
 0x1ce   :  { %vm1065_vm5 = vcmp.eq.s32.totalorder %v1035_v16, %v2070_v26 }
 0x1cf   :  { %v389_v7 = vpop.f32.mrf.mxu3  ;;  %v2170_v23 = vsel %vm1065_vm5, 1.0, %v1621_v59  ;;  %v2176_v36 = vpop.permute.xlu2 %710 }
 0x1d0   :  { %v1528_v13 = vpack.c.bf16 %v389_v7, %v387_v9  ;;  %v1109_v24 = vpack.c.bf16 %v2167_v22, %v2170_v23 }
 0x1d2   :  { %1576 = vst [vmem:[#allocation2 + $0x58] sm:$0xff] %v1528_v13   ;;  %v653_v13 = vpack.c.bf16 %v1376_v38, %v1375_v3  ;;  %v1380_v3 = vsel %vm610_vm8, 1.0, %v1621_v59 }
 0x1d3   :  { %v1509_v54 = vld [vmem:[#allocation2 + $0x8] sm:$0xff] }
 0x1d5   :  { %v454_v17 = vpop.f32.mrf.mxu2  ;;  %v2178_v37 = vpop.permute.xlu0 %585 }
 0x1d7   :  { %v392_v27 = vpop.f32.mrf.mxu3  ;;  %v1044_v25 = vpop.permute.xlu2 %1043 }
 0x1d8   :  { %vm1068_vm6 = vcmp.eq.s32.totalorder %v1044_v25, %v2070_v26  ;;  %v1393_v25 = vsel %vm735_vm15, 1.0, %v1621_v59 }
 0x1d9   :  { %v2183_v30 = vsel %vm1068_vm6, 1.0, %v1621_v59  ;;  %v1505_v57 = vld [vmem:[#allocation2 + $0x58] sm:$0xff]  ;;  %vm737_vm6 = vcmp.eq.s32.totalorder %v2146_v0, %v2070_v26 }
 0x1dd   :  { %v456_v43 = vpop.f32.mrf.mxu2  ;;  %v1041_v45 = vpop.permute.xlu0 %1040 }
 0x1de   :  { %v1553_v18 = vpack.c.bf16 %v456_v43, %v454_v17  ;;  %vm1067_vm7 = vcmp.eq.s32.totalorder %v1041_v45, %v2070_v26  ;;  %v702_v17 = vpop.permute.xlu1 %701 }
 0x1df   :  { %v394_v39 = vpop.f32.mrf.mxu3  ;;  %v2186_v35 = vsel %vm1067_vm7, 1.0, %v1621_v59  ;;  %v2190_v15 = vpop.permute.xlu2 %716  ;;  %vm738_vm5 = vcmp.eq.s32.totalorder %v702_v17, %v2070_v26  ;;  %vm609_vm7 = vcmp.eq.s32.totalorder %v2198_v62, %v2070_v26 }
 0x1e0   :  { %1580 = vst [vmem:[#allocation2 + $0x38] sm:$0xff] %v1553_v18   ;;  %v1533_v40 = vpack.c.bf16 %v394_v39, %v392_v27  ;;  %v1110_v50 = vpack.c.bf16 %v2183_v30, %v2186_v35  ;;  %v1396_v20 = vsel %vm738_vm5, 1.0, %v1621_v59  ;;  %v1379_v38 = vsel %vm609_vm7, 1.0, %v1621_v59 }
 0x1e2   :  { %1577 = vst [vmem:[#allocation2 + $0x18] sm:$0xff] %v1533_v40   ;;  %v1394_v40 = vsel %vm736_vm14, 1.0, %v1621_v59  ;;  %vm741_vm14 = vcmp.eq.s32.totalorder %v2176_v36, %v2070_v26 }
 0x1e5   :  { %v2192_v56 = vpop.permute.xlu0 %591 }
 0x1e6   :  { %v577_v45 = vpop.permute.xlu1 %576  ;;  %vm616_vm5 = vcmp.eq.s32.totalorder %v2192_v56, %v2070_v26 }
 0x1e7   :  { %v502_v44 = vpop.f32.mrf.mxu3  ;;  %v1510_v52 = vld [vmem:[#allocation2 + $0x38] sm:$0xff]  ;;  %v1050_v9 = vpop.permute.xlu2 %1049  ;;  %vm611_vm11 = vcmp.eq.s32.totalorder %v577_v45, %v2070_v26  ;;  %v1386_v29 = vsel %vm616_vm5, 1.0, %v1621_v59 }
 0x1e8   :  { %851 = vmatpush.bf16.msrb.mxu0 %v1510_v52  ;;  %vm1070_vm12 = vcmp.eq.s32.totalorder %v1050_v9, %v2070_v26  ;;  %v655_v9 = vpack.c.bf16 %v1380_v3, %v1379_v38 }
 0x1e9   :  { %v1506_v53 = vld [vmem:[#allocation2 + $0x18] sm:$0xff]  ;;  %v2211_v12 = vsel %vm1070_vm12, 1.0, %v1621_v59  ;;  %vm612_vm12 = vcmp.eq.s32.totalorder %v2162_v11, %v2070_v26 }
 0x1ea   :  { %948 = vmatpush.bf16.msrb.mxu1 %v1506_v53  ;;  %v782_v53 = vpack.c.bf16 %v1394_v40, %v1393_v25  ;;  %v1382_v17 = vsel %vm612_vm12, 1.0, %v1621_v59 }
 0x1ec   :  { %852 = vmatpush.bf16.msrb.mxu0 %v1509_v54 }
 0x1ed   :  { %v1047_v10 = vpop.permute.xlu0 %1046 }
 0x1ee   :  { %949 = vmatpush.bf16.msrb.mxu1 %v1505_v57  ;;  %vm1069_vm13 = vcmp.eq.s32.totalorder %v1047_v10, %v2070_v26 }
 0x1ef   :  { %v504_v63 = vpop.f32.mrf.mxu3  ;;  %v2214_v7 = vsel %vm1069_vm13, 1.0, %v1621_v59  ;;  %v2220_v27 = vpop.permute.xlu2 %722 }
 0x1f0   :  { %v1558_v1 = vpack.c.bf16 %v504_v63, %v502_v44  ;;  %853 = vmatpush.bf16.msrb.mxu0 %v1508_v55  ;;  %v1111_v14 = vpack.c.bf16 %v2211_v12, %v2214_v7  ;;  %v1377_v44 = vsel %vm607_vm0, 1.0, %v1621_v59  ;;  %v708_v55 = vpop.permute.xlu1 %707  ;;  %vm614_vm0 = vcmp.eq.s32.totalorder %v2178_v37, %v2070_v26 }
 0x1f1   :  { %v654_v54 = vpack.c.bf16 %v1378_v49, %v1377_v44  ;;  %vm740_vm9 = vcmp.eq.s32.totalorder %v708_v55, %v2070_v26  ;;  %v1399_v44 = vsel %vm741_vm14, 1.0, %v1621_v59  ;;  %vm745_vm7 = vcmp.eq.s32.totalorder %v2220_v27, %v2070_v26 }
 0x1f2   :  { %1559 = vst [vmem:[#allocation2 + $0x28] sm:$0xff] %v1558_v1   ;;  %950 = vmatpush.bf16.msrb.mxu1 %v1504_v34  ;;  %v1395_v34 = vsel %vm737_vm6, 1.0, %v1621_v59  ;;  %v1403_v56 = vsel %vm745_vm7, 1.0, %v1621_v59 }
 0x1f4   :  { %854 = vmatpush.bf16.msrb.mxu0 %v1507_v5  ;;  %v783_v5 = vpack.c.bf16 %v1396_v20, %v1395_v34 }
 0x1f5   :  { %v2222_v43 = vpop.permute.xlu0 %597 }
 0x1f6   :  { %951 = vmatpush.bf16.msrb.mxu1 %v1503_v46  ;;  %v1397_v46 = vsel %vm739_vm10, 1.0, %v1621_v59 }
 0x1f7   :  { %v507_v16 = vpop.f32.mrf.mxu3  ;;  %1423 = vmatmul.msk.bf16.vlgmr.msrb.gmra.mxu0 %vm822_vm1, %v781_v32  ;;  %v1056_v52 = vpop.permute.xlu2 %1055  ;;  %v1398_v32 = vsel %vm740_vm9, 1.0, %v1621_v59  ;;  %vm618_vm9 = vcmp.eq.s32.totalorder %v2222_v43, %v2070_v26 }
 0x1f8   :  { %vm1072_vm3 = vcmp.eq.s32.totalorder %v1056_v52, %v2070_v26  ;;  %v583_v0 = vpop.permute.xlu1 %582  ;;  %v1384_v52 = vsel %vm614_vm0, 1.0, %v1621_v59  ;;  %v1388_v19 = vsel %vm618_vm9, 1.0, %v1621_v59 }
 0x1f9   :  { %1447 = vmatmul.msk.bf16.vlgmr.msrb.gmra.mxu1 %vm822_vm1, %v653_v13  ;;  %v2238_v51 = vsel %vm1072_vm3, 1.0, %v1621_v59  ;;  %vm613_vm15 = vcmp.eq.s32.totalorder %v583_v0, %v2070_v26  ;;  %vm743_vm3 = vcmp.eq.s32.totalorder %v2190_v15, %v2070_v26 }
 0x1fa   :  { %v1383_v49 = vsel %vm613_vm15, 1.0, %v1621_v59  ;;  %v1401_v55 = vsel %vm743_vm3, 1.0, %v1621_v59 }
 0x1fb   :  { %v657_v36 = vpack.c.bf16 %v1384_v52, %v1383_v49  ;;  %v2353_v52 = vld [vmem:[%s2396_s9] ss:$0 sm:$0xff] }
 0x1fd   :  { %v1053_v42 = vpop.permute.xlu0 %1052 }
 0x1fe   :  { %vm1071_vm4 = vcmp.eq.s32.totalorder %v1053_v42, %v2070_v26 }
 0x1ff   :  { %v509_v18 = vpop.f32.mrf.mxu3  ;;  %v2241_v28 = vsel %vm1071_vm4, 1.0, %v1621_v59  ;;  %v729_v43 = vpop.permute.xlu2 %728 }
 0x200   :  { %v1563_v39 = vpack.c.bf16 %v509_v18, %v507_v16  ;;  %v1112_v57 = vpack.c.bf16 %v2238_v51, %v2241_v28  ;;  %v714_v13 = vpop.permute.xlu1 %713  ;;  %v1381_v16 = vsel %vm611_vm11, 1.0, %v1621_v59  ;;  %v784_v18 = vpack.c.bf16 %v1398_v32, %v1397_v46 }
 0x201   :  { %vm742_vm13 = vcmp.eq.s32.totalorder %v714_v13, %v2070_v26  ;;  %vm747_vm11 = vcmp.eq.s32.totalorder %v729_v43, %v2070_v26 }
 0x202   :  { %1581 = vst [vmem:[#allocation2 + $0x48] sm:$0xff] %v1563_v39   ;;  %v656_v39 = vpack.c.bf16 %v1382_v17, %v1381_v16  ;;  %v1400_v45 = vsel %vm742_vm13, 1.0, %v1621_v59 }
 0x205   :  { %v604_v38 = vpop.permute.xlu0 %603 }
 0x206   :  { %vm620_vm13 = vcmp.eq.s32.totalorder %v604_v38, %v2070_v26 }
 0x207   :  { %v512_v63 = vpop.f32.mrf.mxu3  ;;  %1424 = vmatmul.msk.bf16.gmra.mxu0 %vm822_vm1, %v782_v53  ;;  %v1511_v53 = vld [vmem:[#allocation2 + $0x28] sm:$0xff]  ;;  %v1390_v58 = vsel %vm620_vm13, 1.0, %v1621_v59 }
 0x208   :  { %v589_v40 = vpop.permute.xlu1 %588 }
 0x209   :  { %1448 = vmatmul.msk.bf16.gmra.mxu1 %vm822_vm1, %v654_v54  ;;  %v1512_v25 = vld [vmem:[#allocation2 + $0x48] sm:$0xff]  ;;  %v785_v54 = vpack.c.bf16 %v1400_v45, %v1399_v44  ;;  %vm615_vm4 = vcmp.eq.s32.totalorder %v589_v40, %v2070_v26 }
 0x20f   :  { %v514_v1 = vpop.f32.mrf.mxu3 }
 0x210   :  { %v1568_v2 = vpack.c.bf16 %v514_v1, %v512_v63  ;;  %v720_v42 = vpop.permute.xlu1 %719  ;;  %v1385_v1 = vsel %vm615_vm4, 1.0, %v1621_v59 }
 0x211   :  { %vm744_vm2 = vcmp.eq.s32.totalorder %v720_v42, %v2070_v26 }
 0x212   :  { %1582 = vst [vmem:[#allocation2 + $0x10] sm:$0xff] %v1568_v2   ;;  %v1402_v63 = vsel %vm744_vm2, 1.0, %v1621_v59 }
 0x213   :  { %v786_v31 = vpack.c.bf16 %v1402_v63, %v1401_v55 }
 0x217   :  { %v517_v10 = vpop.f32.mrf.mxu3  ;;  %1425 = vmatmul.msk.bf16.gmra.mxu0 %vm822_vm1, %v783_v5  ;;  %v1405_v5 = vsel %vm747_vm11, 1.0, %v1621_v59 }
 0x218   :  { %v595_v37 = vpop.permute.xlu1 %594 }
 0x219   :  { %1449 = vmatmul.msk.bf16.gmra.mxu1 %vm822_vm1, %v655_v9  ;;  %v1513_v11 = vld [vmem:[#allocation2 + $0x10] sm:$0xff]  ;;  %vm617_vm8 = vcmp.eq.s32.totalorder %v595_v37, %v2070_v26 }
 0x21a   :  { %v1387_v34 = vsel %vm617_vm8, 1.0, %v1621_v59 }
 0x21f   :  { %v519_v4 = vpop.f32.mrf.mxu3 }
 0x220   :  { %v1573_v62 = vpack.c.bf16 %v519_v4, %v517_v10  ;;  %v726_v2 = vpop.permute.xlu1 %725 }
 0x221   :  { %vm746_vm6 = vcmp.eq.s32.totalorder %v726_v2, %v2070_v26 }
 0x222   :  { %1583 = vst [vmem:[#allocation2 + $0x40] sm:$0xff] %v1573_v62   ;;  %v1404_v15 = vsel %vm746_vm6, 1.0, %v1621_v59 }
 0x223   :  { %v787_v47 = vpack.c.bf16 %v1404_v15, %v1403_v56 }
 0x227   :  { %1426 = vmatmul.msk.bf16.gmra.mxu0 %vm822_vm1, %v784_v18 }
 0x228   :  { %v601_v20 = vpop.permute.xlu1 %600 }
 0x229   :  { %v1514_v60 = vld [vmem:[#allocation2 + $0x40] sm:$0xff]  ;;  %1450 = vmatmul.msk.bf16.gmra.mxu1 %vm822_vm1, %v656_v39  ;;  %vm619_vm12 = vcmp.eq.s32.totalorder %v601_v20, %v2070_v26 }
 0x22a   :  { %1174 = vmatpush.bf16.msra.mxu2 %v1514_v60  ;;  %v1389_v9 = vsel %vm619_vm12, 1.0, %v1621_v59 }
 0x22e   :  { %1175 = vmatpush.bf16.msra.mxu2 %v1513_v11 }
 0x230   :  { %v732_v27 = vpop.permute.xlu1 %731 }
 0x231   :  { %vm748_vm10 = vcmp.eq.s32.totalorder %v732_v27, %v2070_v26 }
 0x232   :  { %1176 = vmatpush.bf16.msra.mxu2 %v1512_v25  ;;  %v1406_v3 = vsel %vm748_vm10, 1.0, %v1621_v59 }
 0x233   :  { %v788_v41 = vpack.c.bf16 %v1406_v3, %v1405_v5 }
 0x236   :  { %1177 = vmatpush.bf16.msra.mxu2 %v1511_v53 }
 0x237   :  { %1427 = vmatmul.msk.bf16.gmra.mxu0 %vm822_vm1, %v785_v54 }
 0x239   :  { %1451 = vmatmul.msk.bf16.gmra.mxu1 %vm822_vm1, %v657_v36  ;;  %1487 = vmatmul.msk.bf16.vlgmr.msra.gmra.mxu2 %vm822_vm1, %v1105_v33  ;;  %v658_v33 = vpack.c.bf16 %v1386_v29, %v1385_v1 }
 0x247   :  { %1428 = vmatmul.msk.bf16.gmra.mxu0 %vm822_vm1, %v786_v31 }
 0x249   :  { %1452 = vmatmul.msk.bf16.gmra.mxu1 %vm822_vm1, %v658_v33  ;;  %1488 = vmatmul.msk.bf16.gmra.mxu2 %vm822_vm1, %v1106_v48  ;;  %v659_v48 = vpack.c.bf16 %v1388_v19, %v1387_v34 }
 0x257   :  { %1429 = vmatmul.msk.bf16.gmra.mxu0 %vm822_vm1, %v787_v47 }
 0x259   :  { %1453 = vmatmul.msk.bf16.gmra.mxu1 %vm822_vm1, %v659_v48  ;;  %1489 = vmatmul.msk.bf16.gmra.mxu2 %vm822_vm1, %v1107_v61  ;;  %v660_v61 = vpack.c.bf16 %v1390_v58, %v1389_v9 }
 0x267   :  { %1430 = vmatmul.msk.bf16.gmra.mxu0 %vm822_vm1, %v788_v41 }
 0x269   :  { %1454 = vmatmul.msk.bf16.gmra.mxu1 %vm822_vm1, %v660_v61  ;;  %1490 = vmatmul.msk.bf16.gmra.mxu2 %vm822_vm1, %v1108_v21 }
 0x274   :  { %v856_v26 = vpop.f32.mrf.mxu0 }
 0x276   :  { %v953_v0 = vpop.f32.mrf.mxu1 }
 0x277   :  { %v954_v10 = vadd.f32 %v953_v0, %v856_v26 }
 0x279   :  { %1491 = vmatmul.msk.bf16.gmra.mxu2 %vm822_vm1, %v1109_v24 }
 0x27c   :  { %v858_v59 = vpop.f32.mrf.mxu0 }
 0x27e   :  { %v955_v4 = vpop.f32.mrf.mxu1 }
 0x27f   :  { %v956_v62 = vadd.f32 %v955_v4, %v858_v59 }
 0x284   :  { %v861_v32 = vpop.f32.mrf.mxu0 }
 0x286   :  { %v958_v46 = vpop.f32.mrf.mxu1 }
 0x287   :  { %v959_v13 = vadd.f32 %v958_v46, %v861_v32 }
 0x289   :  { %1492 = vmatmul.msk.bf16.gmra.mxu2 %vm822_vm1, %v1110_v50 }
 0x28c   :  { %v863_v6 = vpop.f32.mrf.mxu0 }
 0x28e   :  { %v960_v8 = vpop.f32.mrf.mxu1 }
 0x28f   :  { %v961_v21 = vadd.f32 %v960_v8, %v863_v6 }
 0x294   :  { %v866_v16 = vpop.f32.mrf.mxu0 }
 0x296   :  { %v963_v17 = vpop.f32.mrf.mxu1 }
 0x297   :  { %v964_v18 = vadd.f32 %v963_v17, %v866_v16 }
 0x299   :  { %1493 = vmatmul.msk.bf16.gmra.mxu2 %vm822_vm1, %v1111_v14 }
 0x29c   :  { %v868_v22 = vpop.f32.mrf.mxu0 }
 0x29e   :  { %v965_v23 = vpop.f32.mrf.mxu1 }
 0x29f   :  { %v966_v24 = vadd.f32 %v965_v23, %v868_v22 }
 0x2a4   :  { %v871_v39 = vpop.f32.mrf.mxu0 }
 0x2a6   :  { %v968_v60 = vpop.f32.mrf.mxu1 }
 0x2a7   :  { %v969_v40 = vadd.f32 %v968_v60, %v871_v39 }
 0x2a9   :  { %1494 = vmatmul.msk.bf16.gmra.mxu2 %vm822_vm1, %v1112_v57 }
 0x2ac   :  { %v873_v30 = vpop.f32.mrf.mxu0 }
 0x2ae   :  { %v970_v35 = vpop.f32.mrf.mxu1 }
 0x2af   :  { %v971_v50 = vadd.f32 %v970_v35, %v873_v30 }
 0x2b4   :  { %v876_v11 = vpop.f32.mrf.mxu0 }
 0x2b6   :  { %v973_v25 = vpop.f32.mrf.mxu1 }
 0x2b7   :  { %v974_v45 = vadd.f32 %v973_v25, %v876_v11 }
 0x2bc   :  { %v1179_v12 = vpop.f32.mrf.mxu2  ;;  %v878_v14 = vpop.f32.mrf.mxu0 }
 0x2bd   :  { %v1219_v7 = vadd.f32 %v1179_v12, %v954_v10 }
 0x2be   :  { %v975_v44 = vpop.f32.mrf.mxu1 }
 0x2bf   :  { %v976_v49 = vadd.f32 %v975_v44, %v878_v14  ;;  %v1239_v51 = vadd.f32 %v2353_v52, %v1219_v7 }
 0x2c1   :  { %v1255_v53 = vmax.f32 %v1239_v51, 0.0 }
 0x2c4   :  { %v1181_v42 = vpop.f32.mrf.mxu2  ;;  %v881_v32 = vpop.f32.mrf.mxu0 }
 0x2c5   :  { %v1220_v28 = vadd.f32 %v1181_v42, %v956_v62 }
 0x2c6   :  { %v978_v62 = vpop.f32.mrf.mxu1 }
 0x2c7   :  { %v1240_v57 = vadd.f32 %v2353_v52, %v1220_v28 }
 0x2c9   :  { %v1256_v54 = vmax.f32 %v1240_v57, 0.0 }
 0x2cb   :  { %v2357_v36 = vpack.c.bf16 %v1256_v54, %v1255_v53 }
 0x2cc   :  { %v1184_v37 = vpop.f32.mrf.mxu2 }
 0x2cd   :  { %v1221_v63 = vadd.f32 %v1184_v37, %v959_v13 }
 0x2cf   :  { %v1241_v1 = vadd.f32 %v2353_v52, %v1221_v63 }
 0x2d1   :  { %v1257_v33 = vmax.f32 %v1241_v1, 0.0 }
 0x2d4   :  { %v1186_v55 = vpop.f32.mrf.mxu2 }
 0x2d5   :  { %v1222_v29 = vadd.f32 %v1186_v55, %v961_v21  ;;  %v980_v21 = vpop.f32.mrf.mxu1 }
 0x2d7   :  { %v1242_v31 = vadd.f32 %v2353_v52, %v1222_v29 }
 0x2d9   :  { %v1258_v2 = vmax.f32 %v1242_v31, 0.0 }
 0x2db   :  { %v2361_v15 = vpack.c.bf16 %v1258_v2, %v1257_v33 }
 0x2dc   :  { %v1189_v56 = vpop.f32.mrf.mxu2 }
 0x2dd   :  { %v1223_v20 = vadd.f32 %v1189_v56, %v964_v18  ;;  %v883_v18 = vpop.f32.mrf.mxu0  ;;  %v979_v56 = vadd.f32 %v978_v62, %v881_v32 }
 0x2de   :  { %v981_v33 = vadd.f32 %v980_v21, %v883_v18 }
 0x2df   :  { %v1243_v19 = vadd.f32 %v2353_v52, %v1223_v20 }
 0x2e1   :  { %v1259_v27 = vmax.f32 %v1243_v19, 0.0 }
 0x2e4   :  { %v1191_v34 = vpop.f32.mrf.mxu2 }
 0x2e5   :  { %v1224_v47 = vadd.f32 %v1191_v34, %v966_v24  ;;  %v983_v24 = vpop.f32.mrf.mxu1  ;;  %v886_v39 = vpop.f32.mrf.mxu0 }
 0x2e6   :  { %v984_v53 = vadd.f32 %v983_v24, %v886_v39 }
 0x2e7   :  { %v1244_v48 = vadd.f32 %v2353_v52, %v1224_v47 }
 0x2e9   :  { %v1260_v43 = vmax.f32 %v1244_v48, 0.0 }
 0x2eb   :  { %v2365_v38 = vpack.c.bf16 %v1260_v43, %v1259_v27 }
 0x2ec   :  { %v1194_v3 = vpop.f32.mrf.mxu2 }
 0x2ed   :  { %v1225_v5 = vadd.f32 %v1194_v3, %v969_v40  ;;  %v985_v40 = vpop.f32.mrf.mxu1  ;;  %v888_v35 = vpop.f32.mrf.mxu0 }
 0x2ee   :  { %v986_v51 = vadd.f32 %v985_v40, %v888_v35 }
 0x2ef   :  { %v1245_v58 = vadd.f32 %v2353_v52, %v1225_v5 }
 0x2f1   :  { %v1261_v26 = vmax.f32 %v1245_v58, 0.0  ;;  %v1271_v58 = vld [vmem:[%s2397_s10] sm:$0xf] }
 0x2f4   :  { %v1196_v9 = vpop.f32.mrf.mxu2 }
 0x2f5   :  { %v1226_v41 = vadd.f32 %v1196_v9, %v971_v50  ;;  %v988_v11 = vpop.f32.mrf.mxu1  ;;  %v891_v25 = vpop.f32.mrf.mxu0 }
 0x2f6   :  { %v989_v12 = vadd.f32 %v988_v11, %v891_v25 }
 0x2f7   :  { %v1246_v61 = vadd.f32 %v2353_v52, %v1226_v41  ;;  %v1284_v41 = vpop.permute.xlu0 %1283 }
 0x2f9   :  { %v1262_v0 = vmax.f32 %v1246_v61, 0.0 }
 0x2fb   :  { %v1275_v10 = vpack.c.bf16 %v1262_v0, %v1261_v26 }
 0x2fc   :  { %v1199_v59 = vpop.f32.mrf.mxu2 }
 0x2fd   :  { %v1227_v4 = vadd.f32 %v1199_v59, %v974_v45  ;;  %v990_v7 = vpop.f32.mrf.mxu1  ;;  %v893_v44 = vpop.f32.mrf.mxu0 }
 0x2ff   :  { %v1247_v13 = vadd.f32 %v2353_v52, %v1227_v4 }
 0x301   :  { %v1263_v16 = vmax.f32 %v1247_v13, 0.0 }
 0x304   :  { %v1201_v46 = vpop.f32.mrf.mxu2 }
 0x305   :  { %v1228_v6 = vadd.f32 %v1201_v46, %v976_v49  ;;  %v991_v49 = vadd.f32 %v990_v7, %v893_v44 }
 0x307   :  { %v1248_v8 = vadd.f32 %v2353_v52, %v1228_v6 }
 0x309   :  { %v1264_v17 = vmax.f32 %v1248_v8, 0.0 }
 0x30b   :  { %v1276_v22 = vpack.c.bf16 %v1264_v17, %v1263_v16 }
 0x30c   :  { %v1204_v23 = vpop.f32.mrf.mxu2 }
 0x30d   :  { %v1229_v19 = vadd.f32 %v1204_v23, %v979_v56 }
 0x30f   :  { %v1249_v43 = vadd.f32 %v2353_v52, %v1229_v19 }
 0x311   :  { %v1265_v5 = vmax.f32 %v1249_v43, 0.0 }
 0x314   :  { %v1206_v60 = vpop.f32.mrf.mxu2 }
 0x315   :  { %v1230_v20 = vadd.f32 %v1206_v60, %v981_v33 }
 0x317   :  { %v1250_v48 = vadd.f32 %v2353_v52, %v1230_v20 }
 0x319   :  { %v1266_v3 = vmax.f32 %v1250_v48, 0.0 }
 0x31b   :  { %v1277_v9 = vpack.c.bf16 %v1266_v3, %v1265_v5 }
 0x31c   :  { %v1209_v30 = vpop.f32.mrf.mxu2 }
 0x31d   :  { %v1231_v63 = vadd.f32 %v1209_v30, %v984_v53 }
 0x31f   :  { %v1251_v2 = vadd.f32 %v2353_v52, %v1231_v63 }
 0x321   :  { %v1267_v47 = vmax.f32 %v1251_v2, 0.0 }
 0x324   :  { %v1211_v50 = vpop.f32.mrf.mxu2 }
 0x325   :  { %v1232_v54 = vadd.f32 %v1211_v50, %v986_v51 }
 0x327   :  { %v1252_v29 = vadd.f32 %v2353_v52, %v1232_v54 }
 0x329   :  { %v1268_v34 = vmax.f32 %v1252_v29, 0.0 }
 0x32b   :  { %v1278_v27 = vpack.c.bf16 %v1268_v34, %v1267_v47 }
 0x32c   :  { %v1214_v45 = vpop.f32.mrf.mxu2 }
 0x32d   :  { %v1233_v14 = vadd.f32 %v1214_v45, %v989_v12 }
 0x32f   :  { %v1253_v28 = vadd.f32 %v2353_v52, %v1233_v14 }
 0x331   :  { %v1269_v55 = vmax.f32 %v1253_v28, 0.0 }
 0x334   :  { %v1216_v42 = vpop.f32.mrf.mxu2 }
 0x335   :  { %v1234_v57 = vadd.f32 %v1216_v42, %v991_v49 }
 0x337   :  { %v1254_v37 = vadd.f32 %v2353_v52, %v1234_v57 }
 0x339   :  { %v1270_v1 = vmax.f32 %v1254_v37, 0.0 }
 0x33b   :  { %v1279_v31 = vpack.c.bf16 %v1270_v1, %v1269_v55 }
 0x33d   :  { %1286 = vmatpush.bf16.xpose.msra.mxu3 %v1279_v31 }
 0x345   :  { %1287 = vmatpush.bf16.xpose.msra.mxu3 %v1278_v27 }
 0x34d   :  { %1288 = vmatpush.bf16.xpose.msra.mxu3 %v1277_v9 }
 0x355   :  { %1289 = vmatpush.bf16.xpose.msra.mxu3 %v1276_v22 }
 0x35d   :  { %1290 = vmatpush.bf16.xpose.msra.mxu3 %v1275_v10 }
 0x365   :  { %1291 = vmatpush.bf16.xpose.msra.mxu3 %v2365_v38 }
 0x36d   :  { %1292 = vmatpush.bf16.xpose.msra.mxu3 %v2361_v15 }
 0x375   :  { %1293 = vmatpush.bf16.xpose.msra.mxu3 %v2357_v36 }
 0x37c   :  { %1294 = vmatmul.bf16.vlgmr.msra.gmra.mxu3 %v1271_v58 }
 0x3ff   :  { %v1295_v52 = vpop.f32.mrf.mxu3 }
 0x400   :  { %v1296_v61 = vadd.f32 %v1295_v52, %v1284_v41 }
 0x402   :  { %v1495_v26 = vmul.f32 -1.442695, %v1296_v61 }
 0x404   :  { %1615 = vpow2.f32 %v1495_v26 }
 0x407   :  { %v1297_v0 = vpop.f32.mrf.mxu3 }
 0x40a   :  { %v1616_v59 = vpop.eup %1615 }
 0x40b   :  { %v1302_v4 = vadd.f32 1.0, %v1616_v59 }
 0x40d   :  { %1617 = vrcp.f32 %v1302_v4  ;;  %v1314_v15 = vand.u32 2147483648, %v1302_v4  ;;  %v1312_v36 = vand.u32 2147483647, %v1302_v4  ;;  %vm1308_vm14 = vweird.f32 %v1302_v4 }
 0x40f   :  { %v1315_v13 = vor.u32 1.1754944e-38, %v1314_v15  ;;  %vm1313_vm0 = vcmp.eq.f32.partialorder %v1312_v36, 8.507059e+37 }
 0x413   :  { %v1618_v10 = vpop.eup %1617 }
 0x414   :  { %v1304_v38 = vmul.f32 %v1618_v10, %v1302_v4  ;;  %vm1309_vm1 = vweird.f32 %v1618_v10 }
 0x415   :  { %vm1310_vm15 = vmor %vm1308_vm14, %vm1309_vm1 }
 0x416   :  { %v1305_v62 = vsub.f32 1.0, %v1304_v38 }
 0x418   :  { %v1306_v32 = vmul.f32 %v1618_v10, %v1305_v62 }
 0x41a   :  { %v1307_v46 = vadd.f32 %v1618_v10, %v1306_v32 }
 0x41c   :  { %v1311_v6 = vsel %vm1310_vm15, %v1618_v10, %v1307_v46 }
 0x41d   :  { %v1316_v8 = vsel %vm1313_vm0, %v1315_v13, %v1311_v6 }
 0x41e   :  { %1318 = vst [vmem:[%s2398_s12] sm:$0xff] %v1316_v8 }

</bundles_post_ra>
